<compile_context>
chip_gen: v6e
topology: v6e:2x2x1
jax: 0.10.0
libtpu: 0.0.40
codegen_flags: <defaults>
</compile_context>

<pallas_src>
import functools

import jax
import jax.numpy as jnp
from jax.experimental import pallas as pl
from jax.experimental.pallas import tpu as pltpu

_MIB = 1024 * 1024


def _round_up(n: int, m: int) -> int:
    return ((n + m - 1) // m) * m


def _sublane_multiple(*dtypes) -> int:
    """Second-minor tiling multiple for the narrowest participating dtype."""
    m = 8
    for dt in dtypes:
        m = max(m, 32 // jnp.dtype(dt).itemsize)
    return m


def _pad_gate_cols(a, H: int, Hp: int):
    """(..., 3H) -> (..., 3*Hp): each H-wide gate block zero-padded to Hp."""
    if Hp == H:
        return a
    pad = [(0, 0)] * (a.ndim - 1) + [(0, Hp - H)]
    parts = [jnp.pad(a[..., k * H:(k + 1) * H], pad) for k in range(3)]
    return jnp.concatenate(parts, axis=-1)


# ---------------------------------------------------------------------------
# Kernel body
# ---------------------------------------------------------------------------
def _gru_kernel(x_ref, h_ref, wx_ref, wh_ref, b_ref, *rest,
                hidden_pad: int, n_norm: int, use_layer_norm: bool, eps: float):
    if use_layer_norm:
        g_ref, beta_ref, o_ref = rest
    else:
        (o_ref,) = rest

    # Two accumulated MXU matmuls instead of concat+dot.  Activations were
    # pre-cast to the weight dtype in the wrapper, so no in-kernel casts here.
    y = jnp.dot(h_ref[...], wh_ref[...], preferred_element_type=jnp.float32)
    y = y + jnp.dot(x_ref[...], wx_ref[...], preferred_element_type=jnp.float32)
    y = y + b_ref[...]                                   # bias pre-cast to f32

    if use_layer_norm:
        # Fused one-pass statistics.  Padded lanes of y are exactly zero
        # (padded weight rows/cols, bias and activations are zero), so summing
        # over the padded width equals summing over the real 3H lanes.
        inv_n = 1.0 / float(n_norm)
        mean = jnp.sum(y, axis=-1, keepdims=True) * inv_n
        mean_sq = jnp.sum(y * y, axis=-1, keepdims=True) * inv_n
        var = jnp.maximum(mean_sq - mean * mean, 0.0)
        y = (y - mean) * jax.lax.rsqrt(var + eps)
        # gamma/beta are zero in padded lanes -> padded lanes return to 0.
        y = y * g_ref[...] + beta_ref[...]               # pre-cast to f32

    Hp = hidden_pad
    reset = jax.nn.sigmoid(y[:, 0 * Hp:1 * Hp])
    cand = jnp.tanh(reset * y[:, 1 * Hp:2 * Hp])
    update = jax.nn.sigmoid(y[:, 2 * Hp:3 * Hp] - 1.0)

    h32 = h_ref[...].astype(jnp.float32)
    new_h = update * cand + (1.0 - update) * h32
    o_ref[...] = new_h.astype(o_ref.dtype)


# ---------------------------------------------------------------------------
# One-time parameter preparation (pad / split / cast). Call once per rollout.
# ---------------------------------------------------------------------------
def prepare_gru_params(weight_t, bias, gamma=None, beta=None, *,
                       input_size: int, hidden_size: int, param_dtype=None):
    """weight_t: (I+H, 3H) == nn.Linear(I+H, 3H).weight.T (rows [0,H) act on hx,
    rows [H, H+I) on x — matching torch.cat((hx, x), -1)).  bias/gamma/beta: (3H,).
    param_dtype: matmul dtype for the weights (e.g. jnp.bfloat16); defaults to
    weight_t.dtype."""
    I, H = input_size, hidden_size
    assert weight_t.shape == (I + H, 3 * H)
    wdt = jnp.dtype(param_dtype) if param_dtype is not None else weight_t.dtype
    Hp = _round_up(H, 128)
    Ip = _round_up(I, 128)
    w_h = jnp.pad(_pad_gate_cols(weight_t[:H, :], H, Hp),
                  ((0, Hp - H), (0, 0))).astype(wdt)
    w_x = jnp.pad(_pad_gate_cols(weight_t[H:, :], H, Hp),
                  ((0, Ip - I), (0, 0))).astype(wdt)
    b_p = _pad_gate_cols(bias.reshape(1, 3 * H), H, Hp).astype(jnp.float32)
    g_p = (None if gamma is None else
           _pad_gate_cols(gamma.reshape(1, 3 * H), H, Hp).astype(jnp.float32))
    bt_p = (None if beta is None else
            _pad_gate_cols(beta.reshape(1, 3 * H), H, Hp).astype(jnp.float32))
    return dict(w_x=w_x, w_h=w_h, b=b_p, gamma=g_p, beta=bt_p,
                input_size=I, hidden_size=H, Ip=Ip, Hp=Hp)


def _pick_batch_tile(B: int, mult: int, block_batch: int):
    """Balanced tile selection: avoids padding ragged B up to a whole tile, and
    keeps >= 2 grid tiles for large batches so both v7x TCs get work."""
    B_aligned = _round_up(max(B, 1), mult)
    n_tiles = pl.cdiv(B_aligned, max(_round_up(block_batch, mult), mult))
    if B_aligned >= 512:        # compute-bound regime: use both TensorCores
        n_tiles = max(n_tiles, 2)
    TB = _round_up(pl.cdiv(B_aligned, n_tiles), mult)
    n_tiles = pl.cdiv(B_aligned, TB)
    return TB, TB * n_tiles, n_tiles


def _vmem_limit_bytes(TB, Ip, Hp, Gp, wdt, act_dt, out_dt, use_layer_norm):
    item = lambda dt: jnp.dtype(dt).itemsize
    wbytes = (Ip + Hp) * Gp * item(wdt)                  # Buffered(1) weights
    pbytes = (3 if use_layer_norm else 1) * Gp * 4       # f32 bias/gamma/beta
    abytes = 2 * TB * (Ip + Hp) * item(act_dt)           # double-buffered inputs
    obytes = 2 * TB * Hp * item(out_dt)                  # double-buffered output
    tmp = 4 * TB * Gp * 4                                # y + LN + gate temporaries
    need = wbytes + pbytes + abytes + obytes + tmp
    try:
        phys = int(pltpu.get_tpu_info().vmem_capacity_bytes)
    except Exception:
        phys = 64 * _MIB       # assume the smallest generation (v7x) if unknown
    cap = max(32 * _MIB, min(phys - 16 * _MIB, 112 * _MIB))
    return int(min(max(need + 8 * _MIB, 32 * _MIB), cap))


# ---------------------------------------------------------------------------
# Forward wrapper
# ---------------------------------------------------------------------------
def layer_norm_gru_cell(x, hx, params, *, batch_first: bool = False,
                        use_layer_norm: bool = True, eps: float = 1e-5,
                        block_batch: int = 512, interpret: bool = False):
    """Forward pass of LayerNormGRUCell with pre-prepared params.

    x  : (1, B, I) if not batch_first else (B, 1, I); also (B, I) or (I,).
    hx : (B, H), (1, B, H), (H,), or None (-> zeros).
    params : output of prepare_gru_params().
    """
    H, I = params["hidden_size"], params["input_size"]
    Hp, Ip = params["Hp"], params["Ip"]
    Gp = 3 * Hp
    w_x, w_h, b_p = params["w_x"], params["w_h"], params["b"]
    wdt = w_x.dtype

    is_3d = x.ndim == 3
    if is_3d:
        seq_axis = int(batch_first)
        assert x.shape[seq_axis] == 1, "sequence length must be 1"
        x = jnp.squeeze(x, axis=seq_axis)
    is_batched = x.ndim == 2
    if not is_batched:
        x = x[None, :]

    B = x.shape[0]
    assert x.shape[1] == I
    if hx is None:
        hx = jnp.zeros((B, H), x.dtype)
    else:
        if hx.ndim == 3:
            hx = jnp.squeeze(hx, axis=0)
        if hx.ndim == 1:
            hx = hx[None, :]
    assert hx.shape == (B, H)
    out_dtype = hx.dtype

    mult = _sublane_multiple(wdt)
    TB, Bp, n_tiles = _pick_batch_tile(B, mult, block_batch)

    # Pre-cast activations to the weight/compute dtype (halves DMA when bf16)
    # and pad to the lane/sublane-aligned layout.
    x_p = jnp.pad(x.astype(wdt), ((0, Bp - B), (0, Ip - I)))
    h_p = jnp.pad(hx.astype(wdt), ((0, Bp - B), (0, Hp - H)))

    kernel = functools.partial(_gru_kernel, hidden_pad=Hp, n_norm=3 * H,
                               use_layer_norm=use_layer_norm, eps=eps)

    item = lambda dt: jnp.dtype(dt).itemsize
    bytes_accessed = ((Ip + Hp) * Gp * item(wdt)
                      + (3 if use_layer_norm else 1) * Gp * 4
                      + Bp * (Ip + Hp) * item(wdt)
                      + Bp * Hp * item(out_dtype))
    cost = pl.CostEstimate(flops=2 * Bp * (Ip + Hp) * Gp,
                           transcendentals=3 * Bp * Hp,
                           bytes_accessed=bytes_accessed)
    vmem_limit = _vmem_limit_bytes(TB, Ip, Hp, Gp, wdt, wdt, out_dtype,
                                   use_layer_norm)

    def _run(single_buffer_weights: bool):
        def row_spec(shape):
            return pl.BlockSpec(shape, lambda i: (i, 0))

        def resident_spec(shape):
            # Constant block index -> stays resident in VMEM across grid steps.
            if single_buffer_weights:
                return pl.BlockSpec(shape, lambda i: (0, 0),
                                    pipeline_mode=pl.Buffered(1))
            return pl.BlockSpec(shape, lambda i: (0, 0))

        args = [x_p, h_p, w_x, w_h, b_p]
        in_specs = [
            row_spec((TB, Ip)),
            row_spec((TB, Hp)),
            resident_spec((Ip, Gp)),
            resident_spec((Hp, Gp)),
            resident_spec((1, Gp)),
        ]
        if use_layer_norm:
            g_p, bt_p = params["gamma"], params["beta"]
            assert g_p is not None and bt_p is not None
            args += [g_p, bt_p]
            in_specs += [resident_spec((1, Gp)), resident_spec((1, Gp))]

        return pl.pallas_call(
            kernel,
            out_shape=jax.ShapeDtypeStruct((Bp, Hp), out_dtype),
            grid=(n_tiles,),
            in_specs=in_specs,
            out_specs=pl.BlockSpec((TB, Hp), lambda i: (i, 0)),
            compiler_params=pltpu.CompilerParams(
                dimension_semantics=("parallel",),       # 2 TCs on v7x
                vmem_limit_bytes=vmem_limit),
            cost_estimate=cost,
            interpret=interpret,
        )(*args)

    try:
        out = _run(True)            # single-buffered resident weights
    except Exception:
        out = _run(False)           # fallback: default (double) buffering

    out = out[:B, :H]
    if not is_batched:
        out = out[0]
    elif is_3d:
        out = out[None, ...]
    return out


# ---------------------------------------------------------------------------
# Test harness
# ---------------------------------------------------------------------------
def _init_params(key, input_size, hidden_size, dtype=jnp.float32):
    """Deterministic init mimicking nn.Linear (uniform(-1/sqrt(fan_in))) + LayerNorm."""
    fan_in = input_size + hidden_size
    k1, k2 = jax.random.split(key)
    bound = 1.0 / jnp.sqrt(jnp.asarray(fan_in, dtype))
    weight_t = jax.random.uniform(k1, (fan_in, 3 * hidden_size), dtype,
                                  minval=-bound, maxval=bound)
    bias = jax.random.uniform(k2, (3 * hidden_size,), dtype,
                              minval=-bound, maxval=bound)
    gamma = jnp.ones((3 * hidden_size,), dtype)
    beta = jnp.zeros((3 * hidden_size,), dtype)
    return weight_t, bias, gamma, beta


def _reference(x, hx, weight_t, bias, gamma, beta, hidden_size,
               use_layer_norm=True, eps=1e-5):
    """Pure-JAX reference for a (B, I) / (B, H) batched call."""
    z = jnp.concatenate([hx, x], axis=-1)
    y = z @ weight_t + bias
    if use_layer_norm:
        mean = y.mean(-1, keepdims=True)
        var = ((y - mean) ** 2).mean(-1, keepdims=True)
        y = (y - mean) / jnp.sqrt(var + eps) * gamma + beta
    H = hidden_size
    reset = jax.nn.sigmoid(y[:, :H])
    cand = jnp.tanh(reset * y[:, H:2 * H])
    update = jax.nn.sigmoid(y[:, 2 * H:] - 1.0)
    return update * cand + (1.0 - update) * hx


if __name__ == "__main__":
    input_size = 32
    hidden_size = 32
    batch = 8

    key = jax.random.PRNGKey(0)
    kp, kx, kh = jax.random.split(key, 3)
    weight_t, bias, gamma, beta = _init_params(kp, input_size, hidden_size)

    # 3-D input with sequence length 1 (batch_first=False): (1, B, I), hx: (1, B, H)
    x = jax.random.normal(kx, (1, batch, input_size), jnp.float32)
    hx = jax.random.normal(kh, (1, batch, hidden_size), jnp.float32)

    # ---- f32 weights, LayerNorm path (how DreamerV2 uses the cell) ----------
    params = prepare_gru_params(weight_t, bias, gamma, beta,
                                input_size=input_size, hidden_size=hidden_size)
    out = layer_norm_gru_cell(x, hx, params, batch_first=False,
                              use_layer_norm=True)
    out = jax.block_until_ready(out)
    assert out.shape == (1, batch, hidden_size), out.shape
    ref = _reference(x[0], hx[0], weight_t, bias, gamma, beta, hidden_size,
                     use_layer_norm=True)
    err = float(jnp.max(jnp.abs(out[0] - ref)))
    assert err < 1e-4, err

    # ---- f32 weights, identity layer-norm (torch module's default) ----------
    params_noln = prepare_gru_params(weight_t, bias,
                                     input_size=input_size,
                                     hidden_size=hidden_size)
    out2 = layer_norm_gru_cell(x, hx, params_noln, use_layer_norm=False)
    out2 = jax.block_until_ready(out2)
    ref2 = _reference(x[0], hx[0], weight_t, bias, gamma, beta, hidden_size,
                      use_layer_norm=False)
    err2 = float(jnp.max(jnp.abs(out2[0] - ref2)))
    assert err2 < 1e-4, err2

    # ---- bf16 weights/activations (the bandwidth-optimized path) ------------
    params_bf16 = prepare_gru_params(weight_t, bias, gamma, beta,
                                     input_size=input_size,
                                     hidden_size=hidden_size,
                                     param_dtype=jnp.bfloat16)
    out3 = layer_norm_gru_cell(x, hx, params_bf16, batch_first=False,
                               use_layer_norm=True)
    out3 = jax.block_until_ready(out3)
    # Reference with the same bf16 rounding of weights and activations (the
    # MXU accumulates bf16 products in f32, so only the input rounding matters).
    w_b = weight_t.astype(jnp.bfloat16).astype(jnp.float32)
    x_b = x[0].astype(jnp.bfloat16).astype(jnp.float32)
    h_b = hx[0].astype(jnp.bfloat16).astype(jnp.float32)
    ref3 = _reference(x_b, h_b, w_b, bias, gamma, beta, hidden_size,
                      use_layer_norm=True)
    err3 = float(jnp.max(jnp.abs(out3[0] - ref3)))
    assert err3 < 5e-3, err3

    print("KERNEL_OK")
</pallas_src>

<mosaic_0001>
module attributes {stable_mosaic.version = 11 : i64} {
  func.func @_gru_kernel(%arg0: i32, %arg1: memref<8x128xf32, #tpu.memory_space<vmem>>, %arg2: memref<8x128xf32, #tpu.memory_space<vmem>>, %arg3: memref<128x384xf32, #tpu.memory_space<vmem>>, %arg4: memref<128x384xf32, #tpu.memory_space<vmem>>, %arg5: memref<1x384xf32, #tpu.memory_space<vmem>>, %arg6: memref<1x384xf32, #tpu.memory_space<vmem>>, %arg7: memref<1x384xf32, #tpu.memory_space<vmem>>, %arg8: memref<8x128xf32, #tpu.memory_space<vmem>>) attributes {dimension_semantics = [#tpu.dimension_semantics<parallel>], iteration_bounds = array<i64: 1>, scalar_prefetch = 0 : i64, scratch_operands = 0 : i64, tpu.core_type = #tpu.core_type<tc>, window_params = [{transform_indices = @transform_0, window_bounds = array<i64: 8, 128>}, {transform_indices = @transform_1, window_bounds = array<i64: 8, 128>}, {pipeline_mode = #tpu.pipeline_mode<synchronous>, transform_indices = @transform_2, window_bounds = array<i64: 128, 384>}, {pipeline_mode = #tpu.pipeline_mode<synchronous>, transform_indices = @transform_3, window_bounds = array<i64: 128, 384>}, {pipeline_mode = #tpu.pipeline_mode<synchronous>, transform_indices = @transform_4, window_bounds = array<i64: 1, 384>}, {pipeline_mode = #tpu.pipeline_mode<synchronous>, transform_indices = @transform_5, window_bounds = array<i64: 1, 384>}, {pipeline_mode = #tpu.pipeline_mode<synchronous>, transform_indices = @transform_6, window_bounds = array<i64: 1, 384>}, {transform_indices = @transform_7, window_bounds = array<i64: 8, 128>}]} {
    %c0 = arith.constant 0 : index
    %c0_0 = arith.constant 0 : index
    %0 = vector.load %arg2[%c0, %c0_0] : memref<8x128xf32, #tpu.memory_space<vmem>>, vector<8x128xf32>
    %c0_1 = arith.constant 0 : index
    %c0_2 = arith.constant 0 : index
    %1 = vector.load %arg4[%c0_1, %c0_2] : memref<128x384xf32, #tpu.memory_space<vmem>>, vector<128x384xf32>
    %cst = arith.constant dense<0.000000e+00> : vector<8x384xf32>
    %2 = tpu.matmul %0, %1, %cst {dimension_numbers = #tpu.dot_dimension_numbers<[1], [0], [0], [1], [0, 0, 1, 1], [], []>} : vector<8x128xf32>, vector<128x384xf32>, vector<8x384xf32> -> vector<8x384xf32>
    %c0_3 = arith.constant 0 : index
    %c0_4 = arith.constant 0 : index
    %3 = vector.load %arg1[%c0_3, %c0_4] : memref<8x128xf32, #tpu.memory_space<vmem>>, vector<8x128xf32>
    %c0_5 = arith.constant 0 : index
    %c0_6 = arith.constant 0 : index
    %4 = vector.load %arg3[%c0_5, %c0_6] : memref<128x384xf32, #tpu.memory_space<vmem>>, vector<128x384xf32>
    %cst_7 = arith.constant dense<0.000000e+00> : vector<8x384xf32>
    %5 = tpu.matmul %3, %4, %cst_7 {dimension_numbers = #tpu.dot_dimension_numbers<[1], [0], [0], [1], [0, 0, 1, 1], [], []>} : vector<8x128xf32>, vector<128x384xf32>, vector<8x384xf32> -> vector<8x384xf32>
    %6 = arith.addf %2, %5 : vector<8x384xf32>
    %c0_8 = arith.constant 0 : index
    %c0_9 = arith.constant 0 : index
    %7 = vector.load %arg5[%c0_8, %c0_9] : memref<1x384xf32, #tpu.memory_space<vmem>>, vector<1x384xf32>
    %8 = vector.broadcast %7 : vector<1x384xf32> to vector<8x384xf32>
    %9 = arith.addf %6, %8 : vector<8x384xf32>
    %cst_10 = arith.constant dense<0.000000e+00> : vector<8xf32>
    %10 = vector.multi_reduction <add>, %9, %cst_10 [1] : vector<8x384xf32> to vector<8xf32>
    %11 = vector.shape_cast %10 : vector<8xf32> to vector<8x1xf32>
    %cst_11 = arith.constant 0.010416667 : f32
    %12 = vector.broadcast %cst_11 : f32 to vector<8x1xf32>
    %13 = arith.mulf %11, %12 : vector<8x1xf32>
    %14 = arith.mulf %9, %9 : vector<8x384xf32>
    %cst_12 = arith.constant dense<0.000000e+00> : vector<8xf32>
    %15 = vector.multi_reduction <add>, %14, %cst_12 [1] : vector<8x384xf32> to vector<8xf32>
    %16 = vector.shape_cast %15 : vector<8xf32> to vector<8x1xf32>
    %cst_13 = arith.constant 0.010416667 : f32
    %17 = vector.broadcast %cst_13 : f32 to vector<8x1xf32>
    %18 = arith.mulf %16, %17 : vector<8x1xf32>
    %19 = arith.mulf %13, %13 : vector<8x1xf32>
    %20 = arith.subf %18, %19 : vector<8x1xf32>
    %cst_14 = arith.constant 0.000000e+00 : f32
    %21 = vector.broadcast %cst_14 : f32 to vector<8x1xf32>
    %22 = arith.maximumf %20, %21 : vector<8x1xf32>
    %23 = vector.broadcast %13 : vector<8x1xf32> to vector<8x384xf32>
    %24 = arith.subf %9, %23 : vector<8x384xf32>
    %cst_15 = arith.constant 9.99999974E-6 : f32
    %25 = vector.broadcast %cst_15 : f32 to vector<8x1xf32>
    %26 = arith.addf %22, %25 : vector<8x1xf32>
    %27 = math.rsqrt %26 : vector<8x1xf32>
    %28 = vector.broadcast %27 : vector<8x1xf32> to vector<8x384xf32>
    %29 = arith.mulf %24, %28 : vector<8x384xf32>
    %c0_16 = arith.constant 0 : index
    %c0_17 = arith.constant 0 : index
    %30 = vector.load %arg6[%c0_16, %c0_17] : memref<1x384xf32, #tpu.memory_space<vmem>>, vector<1x384xf32>
    %31 = vector.broadcast %30 : vector<1x384xf32> to vector<8x384xf32>
    %32 = arith.mulf %29, %31 : vector<8x384xf32>
    %c0_18 = arith.constant 0 : index
    %c0_19 = arith.constant 0 : index
    %33 = vector.load %arg7[%c0_18, %c0_19] : memref<1x384xf32, #tpu.memory_space<vmem>>, vector<1x384xf32>
    %34 = vector.broadcast %33 : vector<1x384xf32> to vector<8x384xf32>
    %35 = arith.addf %32, %34 : vector<8x384xf32>
    %36 = vector.extract_strided_slice %35 {offsets = [0, 0], sizes = [8, 128], strides = [1, 1]} : vector<8x384xf32> to vector<8x128xf32>
    %37 = arith.negf %36 : vector<8x128xf32>
    %38 = math.exp %37 : vector<8x128xf32>
    %cst_20 = arith.constant 1.000000e+00 : f32
    %39 = vector.broadcast %cst_20 : f32 to vector<8x128xf32>
    %40 = arith.addf %39, %38 : vector<8x128xf32>
    %41 = arith.divf %39, %40 : vector<8x128xf32>
    %42 = vector.extract_strided_slice %35 {offsets = [0, 128], sizes = [8, 128], strides = [1, 1]} : vector<8x384xf32> to vector<8x128xf32>
    %43 = arith.mulf %41, %42 : vector<8x128xf32>
    %44 = math.tanh %43 : vector<8x128xf32>
    %45 = vector.extract_strided_slice %35 {offsets = [0, 256], sizes = [8, 128], strides = [1, 1]} : vector<8x384xf32> to vector<8x128xf32>
    %cst_21 = arith.constant 1.000000e+00 : f32
    %46 = vector.broadcast %cst_21 : f32 to vector<8x128xf32>
    %47 = arith.subf %45, %46 : vector<8x128xf32>
    %48 = arith.negf %47 : vector<8x128xf32>
    %49 = math.exp %48 : vector<8x128xf32>
    %cst_22 = arith.constant 1.000000e+00 : f32
    %50 = vector.broadcast %cst_22 : f32 to vector<8x128xf32>
    %51 = arith.addf %50, %49 : vector<8x128xf32>
    %52 = arith.divf %50, %51 : vector<8x128xf32>
    %c0_23 = arith.constant 0 : index
    %c0_24 = arith.constant 0 : index
    %53 = vector.load %arg2[%c0_23, %c0_24] : memref<8x128xf32, #tpu.memory_space<vmem>>, vector<8x128xf32>
    %54 = arith.mulf %52, %44 : vector<8x128xf32>
    %cst_25 = arith.constant 1.000000e+00 : f32
    %55 = vector.broadcast %cst_25 : f32 to vector<8x128xf32>
    %56 = arith.subf %55, %52 : vector<8x128xf32>
    %57 = arith.mulf %56, %53 : vector<8x128xf32>
    %58 = arith.addf %54, %57 : vector<8x128xf32>
    %c0_26 = arith.constant 0 : index
    %c0_27 = arith.constant 0 : index
    %59 = vector.load %arg8[%c0_26, %c0_27] : memref<8x128xf32, #tpu.memory_space<vmem>>, vector<8x128xf32>
    tpu.vector_store %arg8[%c0_26, %c0_27], %58 {strides = array<i32>} : memref<8x128xf32, #tpu.memory_space<vmem>>, vector<8x128xf32>,
    return
  }
  func.func @transform_0(%arg0: i32) -> (i32, i32) {
    %c0_i32 = arith.constant 0 : i32
    %c0_i32_0 = arith.constant 0 : i32
    return %arg0, %c0_i32 : i32, i32
  }
  func.func @transform_1(%arg0: i32) -> (i32, i32) {
    %c0_i32 = arith.constant 0 : i32
    %c0_i32_0 = arith.constant 0 : i32
    return %arg0, %c0_i32 : i32, i32
  }
  func.func @transform_2(%arg0: i32) -> (i32, i32) {
    %c0_i32 = arith.constant 0 : i32
    %c0_i32_0 = arith.constant 0 : i32
    %c0_i32_1 = arith.constant 0 : i32
    return %c0_i32, %c0_i32_0 : i32, i32
  }
  func.func @transform_3(%arg0: i32) -> (i32, i32) {
    %c0_i32 = arith.constant 0 : i32
    %c0_i32_0 = arith.constant 0 : i32
    %c0_i32_1 = arith.constant 0 : i32
    return %c0_i32, %c0_i32_0 : i32, i32
  }
  func.func @transform_4(%arg0: i32) -> (i32, i32) {
    %c0_i32 = arith.constant 0 : i32
    %c0_i32_0 = arith.constant 0 : i32
    %c0_i32_1 = arith.constant 0 : i32
    return %c0_i32, %c0_i32_0 : i32, i32
  }
  func.func @transform_5(%arg0: i32) -> (i32, i32) {
    %c0_i32 = arith.constant 0 : i32
    %c0_i32_0 = arith.constant 0 : i32
    %c0_i32_1 = arith.constant 0 : i32
    return %c0_i32, %c0_i32_0 : i32, i32
  }
  func.func @transform_6(%arg0: i32) -> (i32, i32) {
    %c0_i32 = arith.constant 0 : i32
    %c0_i32_0 = arith.constant 0 : i32
    %c0_i32_1 = arith.constant 0 : i32
    return %c0_i32, %c0_i32_0 : i32, i32
  }
  func.func @transform_7(%arg0: i32) -> (i32, i32) {
    %c0_i32 = arith.constant 0 : i32
    %c0_i32_0 = arith.constant 0 : i32
    return %arg0, %c0_i32 : i32, i32
  }
}

module attributes {stable_mosaic.version = 11 : i64} {
  func.func @_gru_kernel(%arg0: i32, %arg1: memref<8x128xf32, #tpu.memory_space<vmem>>, %arg2: memref<8x128xf32, #tpu.memory_space<vmem>>, %arg3: memref<128x384xf32, #tpu.memory_space<vmem>>, %arg4: memref<128x384xf32, #tpu.memory_space<vmem>>, %arg5: memref<1x384xf32, #tpu.memory_space<vmem>>, %arg6: memref<1x384xf32, #tpu.memory_space<vmem>>, %arg7: memref<1x384xf32, #tpu.memory_space<vmem>>, %arg8: memref<8x128xf32, #tpu.memory_space<vmem>>) attributes {dimension_semantics = [#tpu.dimension_semantics<parallel>], iteration_bounds = array<i64: 1>, scalar_prefetch = 0 : i64, scratch_operands = 0 : i64, tpu.core_type = #tpu.core_type<tc>, window_params = [{transform_indices = @transform_0, window_bounds = array<i64: 8, 128>}, {transform_indices = @transform_1, window_bounds = array<i64: 8, 128>}, {pipeline_mode = #tpu.pipeline_mode<synchronous>, transform_indices = @transform_2, window_bounds = array<i64: 128, 384>}, {pipeline_mode = #tpu.pipeline_mode<synchronous>, transform_indices = @transform_3, window_bounds = array<i64: 128, 384>}, {pipeline_mode = #tpu.pipeline_mode<synchronous>, transform_indices = @transform_4, window_bounds = array<i64: 1, 384>}, {pipeline_mode = #tpu.pipeline_mode<synchronous>, transform_indices = @transform_5, window_bounds = array<i64: 1, 384>}, {pipeline_mode = #tpu.pipeline_mode<synchronous>, transform_indices = @transform_6, window_bounds = array<i64: 1, 384>}, {transform_indices = @transform_7, window_bounds = array<i64: 8, 128>}]} {
    %c0 = arith.constant 0 : index
    %c0_0 = arith.constant 0 : index
    %0 = vector.load %arg2[%c0, %c0_0] : memref<8x128xf32, #tpu.memory_space<vmem>>, vector<8x128xf32>
    %c0_1 = arith.constant 0 : index
    %c0_2 = arith.constant 0 : index
    %1 = vector.load %arg4[%c0_1, %c0_2] : memref<128x384xf32, #tpu.memory_space<vmem>>, vector<128x384xf32>
    %cst = arith.constant dense<0.000000e+00> : vector<8x384xf32>
    %2 = tpu.matmul %0, %1, %cst {dimension_numbers = #tpu.dot_dimension_numbers<[1], [0], [0], [1], [0, 0, 1, 1], [], []>} : vector<8x128xf32>, vector<128x384xf32>, vector<8x384xf32> -> vector<8x384xf32>
    %c0_3 = arith.constant 0 : index
    %c0_4 = arith.constant 0 : index
    %3 = vector.load %arg1[%c0_3, %c0_4] : memref<8x128xf32, #tpu.memory_space<vmem>>, vector<8x128xf32>
    %c0_5 = arith.constant 0 : index
    %c0_6 = arith.constant 0 : index
    %4 = vector.load %arg3[%c0_5, %c0_6] : memref<128x384xf32, #tpu.memory_space<vmem>>, vector<128x384xf32>
    %cst_7 = arith.constant dense<0.000000e+00> : vector<8x384xf32>
    %5 = tpu.matmul %3, %4, %cst_7 {dimension_numbers = #tpu.dot_dimension_numbers<[1], [0], [0], [1], [0, 0, 1, 1], [], []>} : vector<8x128xf32>, vector<128x384xf32>, vector<8x384xf32> -> vector<8x384xf32>
    %6 = arith.addf %2, %5 : vector<8x384xf32>
    %c0_8 = arith.constant 0 : index
    %c0_9 = arith.constant 0 : index
    %7 = vector.load %arg5[%c0_8, %c0_9] : memref<1x384xf32, #tpu.memory_space<vmem>>, vector<1x384xf32>
    %8 = vector.broadcast %7 : vector<1x384xf32> to vector<8x384xf32>
    %9 = arith.addf %6, %8 : vector<8x384xf32>
    %cst_10 = arith.constant dense<0.000000e+00> : vector<8xf32>
    %10 = vector.multi_reduction <add>, %9, %cst_10 [1] : vector<8x384xf32> to vector<8xf32>
    %11 = vector.shape_cast %10 : vector<8xf32> to vector<8x1xf32>
    %cst_11 = arith.constant 0.010416667 : f32
    %12 = vector.broadcast %cst_11 : f32 to vector<8x1xf32>
    %13 = arith.mulf %11, %12 : vector<8x1xf32>
    %14 = arith.mulf %9, %9 : vector<8x384xf32>
    %cst_12 = arith.constant dense<0.000000e+00> : vector<8xf32>
    %15 = vector.multi_reduction <add>, %14, %cst_12 [1] : vector<8x384xf32> to vector<8xf32>
    %16 = vector.shape_cast %15 : vector<8xf32> to vector<8x1xf32>
    %cst_13 = arith.constant 0.010416667 : f32
    %17 = vector.broadcast %cst_13 : f32 to vector<8x1xf32>
    %18 = arith.mulf %16, %17 : vector<8x1xf32>
    %19 = arith.mulf %13, %13 : vector<8x1xf32>
    %20 = arith.subf %18, %19 : vector<8x1xf32>
    %cst_14 = arith.constant 0.000000e+00 : f32
    %21 = vector.broadcast %cst_14 : f32 to vector<8x1xf32>
    %22 = arith.maximumf %20, %21 : vector<8x1xf32>
    %23 = vector.broadcast %13 : vector<8x1xf32> to vector<8x384xf32>
    %24 = arith.subf %9, %23 : vector<8x384xf32>
    %cst_15 = arith.constant 9.99999974E-6 : f32
    %25 = vector.broadcast %cst_15 : f32 to vector<8x1xf32>
    %26 = arith.addf %22, %25 : vector<8x1xf32>
    %27 = math.rsqrt %26 : vector<8x1xf32>
    %28 = vector.broadcast %27 : vector<8x1xf32> to vector<8x384xf32>
    %29 = arith.mulf %24, %28 : vector<8x384xf32>
    %c0_16 = arith.constant 0 : index
    %c0_17 = arith.constant 0 : index
    %30 = vector.load %arg6[%c0_16, %c0_17] : memref<1x384xf32, #tpu.memory_space<vmem>>, vector<1x384xf32>
    %31 = vector.broadcast %30 : vector<1x384xf32> to vector<8x384xf32>
    %32 = arith.mulf %29, %31 : vector<8x384xf32>
    %c0_18 = arith.constant 0 : index
    %c0_19 = arith.constant 0 : index
    %33 = vector.load %arg7[%c0_18, %c0_19] : memref<1x384xf32, #tpu.memory_space<vmem>>, vector<1x384xf32>
    %34 = vector.broadcast %33 : vector<1x384xf32> to vector<8x384xf32>
    %35 = arith.addf %32, %34 : vector<8x384xf32>
    %36 = vector.extract_strided_slice %35 {offsets = [0, 0], sizes = [8, 128], strides = [1, 1]} : vector<8x384xf32> to vector<8x128xf32>
    %37 = arith.negf %36 : vector<8x128xf32>
    %38 = math.exp %37 : vector<8x128xf32>
    %cst_20 = arith.constant 1.000000e+00 : f32
    %39 = vector.broadcast %cst_20 : f32 to vector<8x128xf32>
    %40 = arith.addf %39, %38 : vector<8x128xf32>
    %41 = arith.divf %39, %40 : vector<8x128xf32>
    %42 = vector.extract_strided_slice %35 {offsets = [0, 128], sizes = [8, 128], strides = [1, 1]} : vector<8x384xf32> to vector<8x128xf32>
    %43 = arith.mulf %41, %42 : vector<8x128xf32>
    %44 = math.tanh %43 : vector<8x128xf32>
    %45 = vector.extract_strided_slice %35 {offsets = [0, 256], sizes = [8, 128], strides = [1, 1]} : vector<8x384xf32> to vector<8x128xf32>
    %cst_21 = arith.constant 1.000000e+00 : f32
    %46 = vector.broadcast %cst_21 : f32 to vector<8x128xf32>
    %47 = arith.subf %45, %46 : vector<8x128xf32>
    %48 = arith.negf %47 : vector<8x128xf32>
    %49 = math.exp %48 : vector<8x128xf32>
    %cst_22 = arith.constant 1.000000e+00 : f32
    %50 = vector.broadcast %cst_22 : f32 to vector<8x128xf32>
    %51 = arith.addf %50, %49 : vector<8x128xf32>
    %52 = arith.divf %50, %51 : vector<8x128xf32>
    %c0_23 = arith.constant 0 : index
    %c0_24 = arith.constant 0 : index
    %53 = vector.load %arg2[%c0_23, %c0_24] : memref<8x128xf32, #tpu.memory_space<vmem>>, vector<8x128xf32>
    %54 = arith.mulf %52, %44 : vector<8x128xf32>
    %cst_25 = arith.constant 1.000000e+00 : f32
    %55 = vector.broadcast %cst_25 : f32 to vector<8x128xf32>
    %56 = arith.subf %55, %52 : vector<8x128xf32>
    %57 = arith.mulf %56, %53 : vector<8x128xf32>
    %58 = arith.addf %54, %57 : vector<8x128xf32>
    %c0_26 = arith.constant 0 : index
    %c0_27 = arith.constant 0 : index
    %59 = vector.load %arg8[%c0_26, %c0_27] : memref<8x128xf32, #tpu.memory_space<vmem>>, vector<8x128xf32>
    tpu.vector_store %arg8[%c0_26, %c0_27], %58 {strides = array<i32>} : memref<8x128xf32, #tpu.memory_space<vmem>>, vector<8x128xf32>,
    return
  }
  func.func @transform_0(%arg0: i32) -> (i32, i32) {
    %c0_i32 = arith.constant 0 : i32
    %c0_i32_0 = arith.constant 0 : i32
    return %arg0, %c0_i32 : i32, i32
  }
  func.func @transform_1(%arg0: i32) -> (i32, i32) {
    %c0_i32 = arith.constant 0 : i32
    %c0_i32_0 = arith.constant 0 : i32
    return %arg0, %c0_i32 : i32, i32
  }
  func.func @transform_2(%arg0: i32) -> (i32, i32) {
    %c0_i32 = arith.constant 0 : i32
    %c0_i32_0 = arith.constant 0 : i32
    %c0_i32_1 = arith.constant 0 : i32
    return %c0_i32, %c0_i32_0 : i32, i32
  }
  func.func @transform_3(%arg0: i32) -> (i32, i32) {
    %c0_i32 = arith.constant 0 : i32
    %c0_i32_0 = arith.constant 0 : i32
    %c0_i32_1 = arith.constant 0 : i32
    return %c0_i32, %c0_i32_0 : i32, i32
  }
  func.func @transform_4(%arg0: i32) -> (i32, i32) {
    %c0_i32 = arith.constant 0 : i32
    %c0_i32_0 = arith.constant 0 : i32
    %c0_i32_1 = arith.constant 0 : i32
    return %c0_i32, %c0_i32_0 : i32, i32
  }
  func.func @transform_5(%arg0: i32) -> (i32, i32) {
    %c0_i32 = arith.constant 0 : i32
    %c0_i32_0 = arith.constant 0 : i32
    %c0_i32_1 = arith.constant 0 : i32
    return %c0_i32, %c0_i32_0 : i32, i32
  }
  func.func @transform_6(%arg0: i32) -> (i32, i32) {
    %c0_i32 = arith.constant 0 : i32
    %c0_i32_0 = arith.constant 0 : i32
    %c0_i32_1 = arith.constant 0 : i32
    return %c0_i32, %c0_i32_0 : i32, i32
  }
  func.func @transform_7(%arg0: i32) -> (i32, i32) {
    %c0_i32 = arith.constant 0 : i32
    %c0_i32_0 = arith.constant 0 : i32
    return %arg0, %c0_i32 : i32, i32
  }
}

</mosaic_0001>

<bundles_post_ra>
// kernel: tpu_custom_call.1
= control target key start
LH: loop header
LB: loop body
LE: loop exit
PB: predicated region body
PF: predicated region fallthrough
CT: control target
= control target key end

     0   :  { %12 = vsyncpa [#allocation3], 0  ;;  %s936_s0 = inlined_call_operand.hbm [shape: f32[8,128], index: 0, kind: input, shape index: {}]   ;;  %s937_s1 = inlined_call_operand.hbm [shape: f32[8,128], index: 1, kind: input, shape index: {}]   ;;  %s938_s2 = inlined_call_operand.hbm [shape: f32[128,384], index: 2, kind: input, shape index: {}]   ;;  %s939_s3 = inlined_call_operand.hbm [shape: f32[128,384], index: 3, kind: input, shape index: {}]   ;;  %s940_s4 = inlined_call_operand.vmem [shape: f32[1,384], index: 4, kind: input, shape index: {}]   ;;  %s941_s5 = inlined_call_operand.vmem [shape: f32[1,384], index: 5, kind: input, shape index: {}]   ;;  %s942_s6 = inlined_call_operand.vmem [shape: f32[1,384], index: 6, kind: input, shape index: {}]   ;;  %s943_s7 = inlined_call_operand.hbm [shape: f32[8,128], index: 7, kind: output, shape index: {}]  }
   0x1   :  { %13 = vsyncpa [#allocation6], 0 }
   0x2   :  { %14 = vsyncpa [#allocation9], 0 }
   0x3   :  { %15 = vsyncpa [#allocation4], 0  ;;  %s815_s24 = smov [#allocation5]   ;;  %s816_s26 = smov [#allocation2]  }
   0x4   :  { %s32_s25 = sshll.u32 %s815_s24, 4  ;;  %s22_s27 = sshll.u32 %s816_s26, 4  ;;  %s33_s25 = int_to_ptr.vmem [resolvable:$true] %s32_s25  ;;  %s23_s27 = int_to_ptr.vmem [resolvable:$true] %s22_s27 }
   0x5   :  { %s715_s28 = scalar_lea.vmem %s33_s25, 128  ;;  %p720_p1 = scmp.lt.s32.totalorder %s33_s25, %s33_s25 }
   0x6   :  { %p716_p0 = scmp.ne.s32.totalorder %s33_s25, %s715_s28  ;;  %p721_p2 = scmp.lt.s32.totalorder %s715_s28, %s715_s28 }
   0x8   :  { %p722_p3 = por %p721_p2, %p720_p1 }
   0xa   :  { %p723_p4 = pnand %p722_p3, %p716_p0 }
   0xc   :  { %726 = shalt.err (!%p723_p4)
}
   0xd   :  { %35 = dma.hbm_to_vmem [thread:$0]  %s937_s1, 128, %s33_s25, [#allocation6]  }
   0xe   :  { %s735_s8 = scalar_lea.vmem %s23_s27, 128  ;;  %p740_p6 = scmp.lt.s32.totalorder %s23_s27, %s23_s27 }
   0xf   :  { %p736_p5 = scmp.ne.s32.totalorder %s23_s27, %s735_s8  ;;  %p741_p7 = scmp.lt.s32.totalorder %s735_s8, %s735_s8 }
  0x11   :  { %p742_p8 = por %p741_p7, %p740_p6 }
  0x13   :  { %p743_p9 = pnand %p742_p8, %p736_p5 }
  0x15   :  { %746 = shalt.err (!%p743_p9)
}
  0x16   :  { %25 = dma.hbm_to_vmem [thread:$0]  %s936_s0, 128, %s23_s27, [#allocation3]  }
  0x17   :  { %s817_s11 = smov [#allocation7]  }
  0x18   :  { %s41_s12 = sshll.u32 %s817_s11, 4  ;;  %s42_s12 = int_to_ptr.vmem [resolvable:$true] %s41_s12 }
  0x19   :  { %s755_s13 = scalar_lea.vmem %s42_s12, 6144  ;;  %p760_p11 = scmp.lt.s32.totalorder %s42_s12, %s42_s12 }
  0x1a   :  { %p756_p10 = scmp.ne.s32.totalorder %s42_s12, %s755_s13  ;;  %p761_p12 = scmp.lt.s32.totalorder %s755_s13, %s755_s13 }
  0x1c   :  { %p762_p13 = por %p761_p12, %p760_p11 }
  0x1e   :  { %p763_p0 = pnand %p762_p13, %p756_p10 }
  0x20   :  { %766 = shalt.err (!%p763_p0)
}
  0x21   :  { %s818_s1 = smov 384   ;;  %s819_s14 = smov 24  }
  0x22   :  { %47 = dma.hbm_to_vmem [thread:$0]  %s938_s2, 6144, %s42_s12, [#allocation6], %s818_s1, %s818_s1, %s819_s14  }
  0x23   :  { %s820_s17 = smov [#allocation8]  }
  0x24   :  { %s53_s18 = sshll.u32 %s820_s17, 4  ;;  %s54_s18 = int_to_ptr.vmem [resolvable:$true] %s53_s18 }
  0x25   :  { %s775_s0 = scalar_lea.vmem %s54_s18, 6144  ;;  %p780_p2 = scmp.lt.s32.totalorder %s54_s18, %s54_s18 }
  0x26   :  { %p776_p1 = scmp.ne.s32.totalorder %s54_s18, %s775_s0  ;;  %p781_p3 = scmp.lt.s32.totalorder %s775_s0, %s775_s0 }
  0x28   :  { %p782_p4 = por %p781_p3, %p780_p2 }
  0x2a   :  { %p783_p5 = pnand %p782_p4, %p776_p1 }
  0x2c   :  { %786 = shalt.err (!%p783_p5)
}
  0x2d   :  { %59 = dma.hbm_to_vmem [thread:$0]  %s939_s3, 6144, %s54_s18, [#allocation9], %s818_s1, %s818_s1, %s819_s14  }
  0x2e   :  { %807 = dma.done.wait [#allocation3], 128  }
  0x2f   :  { %808 = vsyncadd [#allocation3], 4294967168 }
  0x30   :  { %809 = dma.done.wait [#allocation6], 6272  }
  0x31   :  { %810 = vsyncadd [#allocation6], 4294961024 }
  0x32   :  { %811 = dma.done.wait [#allocation9], 6144  }
  0x33   :  { %812 = vsyncadd [#allocation9], 4294961152  ;;  %v821_v0 = vmov 0.0   ;;  %vm822_vm0 = vmmov 0   ;;  %v174_v1 = vld [vmem:[#allocation7 + $0x170] sm:$0xff]  ;;  %v175_v2 = vld [vmem:[#allocation7 + $0x178] sm:$0xff] }
  0x34   :  { %616 = vmatprep.subr.mxu1 %v821_v0  ;;  %240 = vmatprep.mubr.f32.mxu0 %v821_v0  ;;  %v173_v3 = vld [vmem:[#allocation7 + $0x168] sm:$0xff]  ;;  %v171_v4 = vld [vmem:[#allocation7 + $0x158] sm:$0xff]  ;;  %v172_v5 = vld [vmem:[#allocation7 + $0x160] sm:$0xff] }
  0x35   :  { %648 = vmatprep.mubr.msk.f32.mxu1 %vm822_vm0, %v821_v0  ;;  %176 = vmatprep.subr.mxu0 %v174_v1  ;;  %v170_v6 = vld [vmem:[#allocation7 + $0x150] sm:$0xff]  ;;  %v168_v7 = vld [vmem:[#allocation7 + $0x140] sm:$0xff]  ;;  %v169_v8 = vld [vmem:[#allocation7 + $0x148] sm:$0xff] }
  0x36   :  { %617 = vmatpush3.msra.mxu1 %v175_v2  ;;  %177 = vmatpush1.msra.mxu0 %v173_v3  ;;  %v167_v9 = vld [vmem:[#allocation7 + $0x138] sm:$0xff]  ;;  %v165_v10 = vld [vmem:[#allocation7 + $0x128] sm:$0xff]  ;;  %v166_v11 = vld [vmem:[#allocation7 + $0x130] sm:$0xff] }
  0x37   :  { %618 = vmatprep.subr.mxu1 %v821_v0  ;;  %178 = vmatprep.subr.mxu0 %v171_v4  ;;  %v164_v12 = vld [vmem:[#allocation7 + $0x120] sm:$0xff]  ;;  %v162_v13 = vld [vmem:[#allocation7 + $0x110] sm:$0xff]  ;;  %v163_v14 = vld [vmem:[#allocation7 + $0x118] sm:$0xff] }
  0x38   :  { %619 = vmatpush3.msra.mxu1 %v172_v5  ;;  %179 = vmatpush1.msra.mxu0 %v170_v6  ;;  %v161_v15 = vld [vmem:[#allocation7 + $0x108] sm:$0xff]  ;;  %v159_v16 = vld [vmem:[#allocation7 + $0xf8] sm:$0xff]  ;;  %v160_v17 = vld [vmem:[#allocation7 + $0x100] sm:$0xff] }
  0x39   :  { %620 = vmatprep.subr.mxu1 %v821_v0  ;;  %180 = vmatprep.subr.mxu0 %v168_v7  ;;  %v158_v18 = vld [vmem:[#allocation7 + $0xf0] sm:$0xff]  ;;  %v156_v19 = vld [vmem:[#allocation7 + $0xe0] sm:$0xff]  ;;  %v157_v20 = vld [vmem:[#allocation7 + $0xe8] sm:$0xff] }
  0x3a   :  { %621 = vmatpush3.msra.mxu1 %v169_v8  ;;  %181 = vmatpush1.msra.mxu0 %v167_v9  ;;  %v155_v21 = vld [vmem:[#allocation7 + $0xd8] sm:$0xff]  ;;  %v153_v22 = vld [vmem:[#allocation7 + $0xc8] sm:$0xff]  ;;  %v154_v23 = vld [vmem:[#allocation7 + $0xd0] sm:$0xff] }
  0x3b   :  { %622 = vmatprep.subr.mxu1 %v821_v0  ;;  %182 = vmatprep.subr.mxu0 %v165_v10  ;;  %v152_v24 = vld [vmem:[#allocation7 + $0xc0] sm:$0xff]  ;;  %v150_v25 = vld [vmem:[#allocation7 + $0xb0] sm:$0xff]  ;;  %v151_v26 = vld [vmem:[#allocation7 + $0xb8] sm:$0xff] }
  0x3c   :  { %623 = vmatpush3.msra.mxu1 %v166_v11  ;;  %183 = vmatpush1.msra.mxu0 %v164_v12  ;;  %v149_v27 = vld [vmem:[#allocation7 + $0xa8] sm:$0xff]  ;;  %v147_v28 = vld [vmem:[#allocation7 + $0x98] sm:$0xff]  ;;  %v148_v29 = vld [vmem:[#allocation7 + $0xa0] sm:$0xff] }
  0x3d   :  { %624 = vmatprep.subr.mxu1 %v821_v0  ;;  %184 = vmatprep.subr.mxu0 %v162_v13  ;;  %v146_v30 = vld [vmem:[#allocation7 + $0x90] sm:$0xff]  ;;  %v144_v31 = vld [vmem:[#allocation7 + $0x80] sm:$0xff]  ;;  %v145_v32 = vld [vmem:[#allocation7 + $0x88] sm:$0xff] }
  0x3e   :  { %625 = vmatpush3.msra.mxu1 %v163_v14  ;;  %185 = vmatpush1.msra.mxu0 %v161_v15  ;;  %v143_v33 = vld [vmem:[#allocation7 + $0x78] sm:$0xff]  ;;  %v141_v34 = vld [vmem:[#allocation7 + $0x68] sm:$0xff]  ;;  %v142_v35 = vld [vmem:[#allocation7 + $0x70] sm:$0xff] }
  0x3f   :  { %626 = vmatprep.subr.mxu1 %v821_v0  ;;  %186 = vmatprep.subr.mxu0 %v159_v16  ;;  %v140_v36 = vld [vmem:[#allocation7 + $0x60] sm:$0xff]  ;;  %v138_v37 = vld [vmem:[#allocation7 + $0x50] sm:$0xff]  ;;  %v139_v38 = vld [vmem:[#allocation7 + $0x58] sm:$0xff] }
  0x40   :  { %627 = vmatpush3.msra.mxu1 %v160_v17  ;;  %187 = vmatpush1.msra.mxu0 %v158_v18  ;;  %v137_v39 = vld [vmem:[#allocation7 + $0x48] sm:$0xff]  ;;  %v135_v40 = vld [vmem:[#allocation7 + $0x38] sm:$0xff]  ;;  %v136_v41 = vld [vmem:[#allocation7 + $0x40] sm:$0xff] }
  0x41   :  { %628 = vmatprep.subr.mxu1 %v821_v0  ;;  %188 = vmatprep.subr.mxu0 %v156_v19  ;;  %v134_v42 = vld [vmem:[#allocation7 + $0x30] sm:$0xff]  ;;  %v132_v43 = vld [vmem:[#allocation7 + $0x20] sm:$0xff]  ;;  %v133_v44 = vld [vmem:[#allocation7 + $0x28] sm:$0xff] }
  0x42   :  { %629 = vmatpush3.msra.mxu1 %v157_v20  ;;  %189 = vmatpush1.msra.mxu0 %v155_v21  ;;  %v131_v45 = vld [vmem:[#allocation7 + $0x18] sm:$0xff]  ;;  %v129_v46 = vld [vmem:[#allocation7 + $0x8] sm:$0xff]  ;;  %v130_v47 = vld [vmem:[#allocation7 + $0x10] sm:$0xff] }
  0x43   :  { %630 = vmatprep.subr.mxu1 %v821_v0  ;;  %190 = vmatprep.subr.mxu0 %v153_v22  ;;  %v128_v48 = vld [vmem:[#allocation7] sm:$0xff]  ;;  %v127_v49 = vld [vmem:[#allocation2] sm:$0xff]  ;;  %v126_v51 = vld [vmem:[#allocation8 + $0x178] sm:$0xff] }
  0x44   :  { %631 = vmatpush3.msra.mxu1 %v154_v23  ;;  %191 = vmatpush1.msra.mxu0 %v152_v24  ;;  %v125_v50 = vld [vmem:[#allocation8 + $0x170] sm:$0xff]  ;;  %v124_v52 = vld [vmem:[#allocation8 + $0x168] sm:$0xff]  ;;  %v122_v53 = vld [vmem:[#allocation8 + $0x158] sm:$0xff] }
  0x45   :  { %632 = vmatprep.subr.mxu1 %v821_v0  ;;  %192 = vmatprep.subr.mxu0 %v150_v25  ;;  %v123_v54 = vld [vmem:[#allocation8 + $0x160] sm:$0xff]  ;;  %v121_v55 = vld [vmem:[#allocation8 + $0x150] sm:$0xff]  ;;  %v120_v57 = vld [vmem:[#allocation8 + $0x148] sm:$0xff] }
  0x46   :  { %633 = vmatpush3.msra.mxu1 %v151_v26  ;;  %193 = vmatpush1.msra.mxu0 %v149_v27  ;;  %v119_v56 = vld [vmem:[#allocation8 + $0x140] sm:$0xff]  ;;  %v118_v58 = vld [vmem:[#allocation8 + $0x138] sm:$0xff]  ;;  %v116_v59 = vld [vmem:[#allocation8 + $0x128] sm:$0xff] }
  0x47   :  { %634 = vmatprep.subr.mxu1 %v821_v0  ;;  %194 = vmatprep.subr.mxu0 %v147_v28  ;;  %v117_v60 = vld [vmem:[#allocation8 + $0x130] sm:$0xff]  ;;  %v115_v61 = vld [vmem:[#allocation8 + $0x120] sm:$0xff]  ;;  %v114_v63 = vld [vmem:[#allocation8 + $0x118] sm:$0xff] }
  0x48   :  { %635 = vmatpush3.msra.mxu1 %v148_v29  ;;  %195 = vmatpush1.msra.mxu0 %v146_v30  ;;  %v113_v62 = vld [vmem:[#allocation8 + $0x110] sm:$0xff]  ;;  %v112_v1 = vld [vmem:[#allocation8 + $0x108] sm:$0xff]  ;;  %v110_v2 = vld [vmem:[#allocation8 + $0xf8] sm:$0xff] }
  0x49   :  { %636 = vmatprep.subr.mxu1 %v821_v0  ;;  %196 = vmatprep.subr.mxu0 %v144_v31  ;;  %v111_v3 = vld [vmem:[#allocation8 + $0x100] sm:$0xff]  ;;  %v109_v4 = vld [vmem:[#allocation8 + $0xf0] sm:$0xff]  ;;  %v108_v6 = vld [vmem:[#allocation8 + $0xe8] sm:$0xff] }
  0x4a   :  { %637 = vmatpush3.msra.mxu1 %v145_v32  ;;  %197 = vmatpush1.msra.mxu0 %v143_v33  ;;  %v107_v5 = vld [vmem:[#allocation8 + $0xe0] sm:$0xff]  ;;  %v106_v7 = vld [vmem:[#allocation8 + $0xd8] sm:$0xff]  ;;  %v104_v8 = vld [vmem:[#allocation8 + $0xc8] sm:$0xff] }
  0x4b   :  { %638 = vmatprep.subr.mxu1 %v821_v0  ;;  %198 = vmatprep.subr.mxu0 %v141_v34  ;;  %v105_v9 = vld [vmem:[#allocation8 + $0xd0] sm:$0xff]  ;;  %v103_v10 = vld [vmem:[#allocation8 + $0xc0] sm:$0xff]  ;;  %v102_v12 = vld [vmem:[#allocation8 + $0xb8] sm:$0xff] }
  0x4c   :  { %639 = vmatpush3.msra.mxu1 %v142_v35  ;;  %199 = vmatpush1.msra.mxu0 %v140_v36  ;;  %v101_v11 = vld [vmem:[#allocation8 + $0xb0] sm:$0xff]  ;;  %v100_v13 = vld [vmem:[#allocation8 + $0xa8] sm:$0xff]  ;;  %v98_v14 = vld [vmem:[#allocation8 + $0x98] sm:$0xff] }
  0x4d   :  { %640 = vmatprep.subr.mxu1 %v821_v0  ;;  %200 = vmatprep.subr.mxu0 %v138_v37  ;;  %v99_v15 = vld [vmem:[#allocation8 + $0xa0] sm:$0xff]  ;;  %v97_v16 = vld [vmem:[#allocation8 + $0x90] sm:$0xff]  ;;  %v96_v18 = vld [vmem:[#allocation8 + $0x88] sm:$0xff] }
  0x4e   :  { %641 = vmatpush3.msra.mxu1 %v139_v38  ;;  %201 = vmatpush1.msra.mxu0 %v137_v39  ;;  %v95_v17 = vld [vmem:[#allocation8 + $0x80] sm:$0xff]  ;;  %v94_v19 = vld [vmem:[#allocation8 + $0x78] sm:$0xff]  ;;  %v92_v20 = vld [vmem:[#allocation8 + $0x68] sm:$0xff]  ;;  %v460_v38 = vlaneseq }
  0x4f   :  { %642 = vmatprep.subr.mxu1 %v821_v0  ;;  %202 = vmatprep.subr.mxu0 %v135_v40  ;;  %v93_v21 = vld [vmem:[#allocation8 + $0x70] sm:$0xff]  ;;  %v91_v22 = vld [vmem:[#allocation8 + $0x60] sm:$0xff]  ;;  %v90_v24 = vld [vmem:[#allocation8 + $0x58] sm:$0xff] }
  0x50   :  { %643 = vmatpush3.msra.mxu1 %v136_v41  ;;  %203 = vmatpush1.msra.mxu0 %v134_v42  ;;  %v89_v23 = vld [vmem:[#allocation8 + $0x50] sm:$0xff]  ;;  %v88_v25 = vld [vmem:[#allocation8 + $0x48] sm:$0xff]  ;;  %v86_v26 = vld [vmem:[#allocation8 + $0x38] sm:$0xff]  ;;  %v461_v39 = vshrl.u32 %v460_v38, 7 }
  0x51   :  { %644 = vmatprep.subr.mxu1 %v821_v0  ;;  %204 = vmatprep.subr.mxu0 %v132_v43  ;;  %v87_v27 = vld [vmem:[#allocation8 + $0x40] sm:$0xff]  ;;  %v85_v28 = vld [vmem:[#allocation8 + $0x30] sm:$0xff]  ;;  %v84_v30 = vld [vmem:[#allocation8 + $0x28] sm:$0xff] }
  0x52   :  { %645 = vmatpush3.msra.mxu1 %v133_v44  ;;  %205 = vmatpush1.msra.mxu0 %v131_v45  ;;  %v83_v29 = vld [vmem:[#allocation8 + $0x20] sm:$0xff]  ;;  %v82_v31 = vld [vmem:[#allocation8 + $0x18] sm:$0xff]  ;;  %v80_v32 = vld [vmem:[#allocation8 + $0x8] sm:$0xff]  ;;  %v462_v41 = vsub.s32 0, %v461_v39  ;;  %v921_v43 = vsub.s32 1, %v461_v39 }
  0x53   :  { %646 = vmatprep.subr.mxu1 %v821_v0  ;;  %206 = vmatprep.subr.mxu0 %v129_v46  ;;  %v81_v33 = vld [vmem:[#allocation8 + $0x10] sm:$0xff]  ;;  %v79_v34 = vld [vmem:[#allocation8] sm:$0xff]  ;;  %v911_v35 = vld [vmem:[#allocation5] sm:$0xff]  ;;  %v470_v46 = vsub.s32 2, %v461_v39 }
  0x54   :  { %647 = vmatpush3.msra.mxu1 %v130_v47  ;;  %207 = vmatpush1.msra.mxu0 %v128_v48  ;;  %v458_v42 = vld [vmem:[%s940_s4] sm:$0x7] }
  0x55   :  { %651 = vmatprep.subr.mxu1 %v821_v0  ;;  %241 = vmatmul.mubr.f32.vlgmr.msra.gmra.mxu0 %v127_v49 }
  0x56   :  { %649 = vmatmul.mubr.f32.vlgmr.msra.gmra.mxu1 %v127_v49  ;;  %317 = vmatprep.subr.mxu0 %v125_v50  ;;  %v467_v49 = vrot.slane %v458_v42, %v921_v43 }
  0x57   :  { %652 = vmatpush3.msra.mxu1 %v126_v51  ;;  %318 = vmatpush1.msra.mxu0 %v124_v52 }
  0x58   :  { %653 = vmatprep.subr.mxu1 %v821_v0  ;;  %319 = vmatprep.subr.mxu0 %v122_v53  ;;  %v471_v53 = vrot.slane %v458_v42, %v470_v46 }
  0x59   :  { %654 = vmatpush3.msra.mxu1 %v123_v54  ;;  %320 = vmatpush1.msra.mxu0 %v121_v55 }
  0x5a   :  { %655 = vmatprep.subr.mxu1 %v821_v0  ;;  %321 = vmatprep.subr.mxu0 %v119_v56 }
  0x5b   :  { %656 = vmatpush3.msra.mxu1 %v120_v57  ;;  %322 = vmatpush1.msra.mxu0 %v118_v58 }
  0x5c   :  { %657 = vmatprep.subr.mxu1 %v821_v0  ;;  %323 = vmatprep.subr.mxu0 %v116_v59 }
  0x5d   :  { %658 = vmatpush3.msra.mxu1 %v117_v60  ;;  %324 = vmatpush1.msra.mxu0 %v115_v61 }
  0x5e   :  { %659 = vmatprep.subr.mxu1 %v821_v0  ;;  %325 = vmatprep.subr.mxu0 %v113_v62 }
  0x5f   :  { %660 = vmatpush3.msra.mxu1 %v114_v63  ;;  %326 = vmatpush1.msra.mxu0 %v112_v1 }
  0x60   :  { %661 = vmatprep.subr.mxu1 %v821_v0  ;;  %327 = vmatprep.subr.mxu0 %v110_v2 }
  0x61   :  { %662 = vmatpush3.msra.mxu1 %v111_v3  ;;  %328 = vmatpush1.msra.mxu0 %v109_v4 }
  0x62   :  { %663 = vmatprep.subr.mxu1 %v821_v0  ;;  %329 = vmatprep.subr.mxu0 %v107_v5 }
  0x63   :  { %664 = vmatpush3.msra.mxu1 %v108_v6  ;;  %330 = vmatpush1.msra.mxu0 %v106_v7 }
  0x64   :  { %665 = vmatprep.subr.mxu1 %v821_v0  ;;  %331 = vmatprep.subr.mxu0 %v104_v8 }
  0x65   :  { %666 = vmatpush3.msra.mxu1 %v105_v9  ;;  %332 = vmatpush1.msra.mxu0 %v103_v10  ;;  %v502_v10 = vld [vmem:[%s941_s5] sm:$0x7]  ;;  %s823_s5 = smov [#allocation10]  }
  0x66   :  { %667 = vmatprep.subr.mxu1 %v821_v0  ;;  %333 = vmatprep.subr.mxu0 %v101_v11  ;;  %v522_v11 = vld [vmem:[%s942_s6] sm:$0x7]  ;;  %s568_s6 = sshll.u32 %s823_s5, 4  ;;  %s569_s6 = int_to_ptr.vmem [resolvable:$true] %s568_s6 }
  0x67   :  { %668 = vmatpush3.msra.mxu1 %v102_v12  ;;  %334 = vmatpush1.msra.mxu0 %v100_v13  ;;  %v515_v12 = vrot.slane %v502_v10, %v470_v46  ;;  %v507_v13 = vrot.slane %v502_v10, %v462_v41  ;;  %s787_s24 = scalar_lea.vmem %s569_s6, 128  ;;  %p792_p7 = scmp.lt.s32.totalorder %s569_s6, %s569_s6 }
  0x68   :  { %669 = vmatprep.subr.mxu1 %v821_v0  ;;  %335 = vmatprep.subr.mxu0 %v98_v14  ;;  %p788_p6 = scmp.ne.s32.totalorder %s569_s6, %s787_s24  ;;  %p793_p8 = scmp.lt.s32.totalorder %s787_s24, %s787_s24 }
  0x69   :  { %670 = vmatpush3.msra.mxu1 %v99_v15  ;;  %336 = vmatpush1.msra.mxu0 %v97_v16 }
  0x6a   :  { %671 = vmatprep.subr.mxu1 %v821_v0  ;;  %337 = vmatprep.subr.mxu0 %v95_v17  ;;  %v535_v17 = vrot.slane %v522_v11, %v470_v46  ;;  %p794_p9 = por %p793_p8, %p792_p7 }
  0x6b   :  { %672 = vmatpush3.msra.mxu1 %v96_v18  ;;  %338 = vmatpush1.msra.mxu0 %v94_v19  ;;  %v527_v18 = vrot.slane %v522_v11, %v462_v41 }
  0x6c   :  { %673 = vmatprep.subr.mxu1 %v821_v0  ;;  %339 = vmatprep.subr.mxu0 %v92_v20  ;;  %p795_p10 = pnand %p794_p9, %p788_p6 }
  0x6d   :  { %674 = vmatpush3.msra.mxu1 %v93_v21  ;;  %340 = vmatpush1.msra.mxu0 %v91_v22 }
  0x6e   :  { %675 = vmatprep.subr.mxu1 %v821_v0  ;;  %341 = vmatprep.subr.mxu0 %v89_v23 }
  0x6f   :  { %676 = vmatpush3.msra.mxu1 %v90_v24  ;;  %342 = vmatpush1.msra.mxu0 %v88_v25 }
  0x70   :  { %677 = vmatprep.subr.mxu1 %v821_v0  ;;  %343 = vmatprep.subr.mxu0 %v86_v26 }
  0x71   :  { %678 = vmatpush3.msra.mxu1 %v87_v27  ;;  %344 = vmatpush1.msra.mxu0 %v85_v28 }
  0x72   :  { %679 = vmatprep.subr.mxu1 %v821_v0  ;;  %345 = vmatprep.subr.mxu0 %v83_v29 }
  0x73   :  { %680 = vmatpush3.msra.mxu1 %v84_v30  ;;  %346 = vmatpush1.msra.mxu0 %v82_v31 }
  0x74   :  { %681 = vmatprep.subr.mxu1 %v821_v0  ;;  %347 = vmatprep.subr.mxu0 %v80_v32  ;;  %v511_v32 = vrot.slane %v502_v10, %v921_v43 }
  0x75   :  { %682 = vmatpush3.msra.mxu1 %v81_v33  ;;  %683 = vmatprep.mubr.msk.f32.mxu1 %vm822_vm0, %v821_v0 }
  0x76   :  { %348 = vmatpush1.msra.mxu0 %v79_v34  ;;  %381 = vmatprep.mubr.f32.mxu0 %v821_v0  ;;  %v463_v0 = vrot.slane %v458_v42, %v462_v41 }
  0x77   :  { %684 = vmatmul.mubr.f32.vlgmr.msra.gmra.mxu1 %v911_v35  ;;  %382 = vmatmul.mubr.f32.vlgmr.msra.gmra.mxu0 %v911_v35 }
 0x115   :  { %v242_v40 = vpop.f32.mrf.mxu0 }
 0x116   :  { %v313_v36 = vpop.f32.mrf.mxu1 }
 0x117   :  { %v244_v44 = vpop.f32.mrf.mxu0 }
 0x118   :  { %v650_v37 = vpop.f32.mrf.mxu1 }
 0x137   :  { %v454_v45 = vpop.f32.mrf.mxu1  ;;  %v383_v47 = vpop.f32.mrf.mxu0 }
 0x138   :  { %v384_v48 = vadd.f32 %v383_v47, %v242_v40  ;;  %v455_v52 = vadd.f32 %v454_v45, %v313_v36  ;;  %v531_v36 = vrot.slane %v522_v11, %v921_v43 }
 0x139   :  { %v685_v50 = vpop.f32.mrf.mxu1  ;;  %v385_v51 = vpop.f32.mrf.mxu0 }
 0x13a   :  { %v475_v54 = vadd.f32 %v463_v0, %v384_v48  ;;  %v386_v55 = vadd.f32 %v385_v51, %v244_v44  ;;  %v477_v57 = vadd.f32 %v471_v53, %v455_v52 }
 0x13c   :  { %v476_v56 = vadd.f32 %v467_v49, %v386_v55  ;;  %v483_v59 = vmul.f32 %v475_v54, %v475_v54  ;;  %v485_v63 = vmul.f32 %v477_v57, %v477_v57 }
 0x13e   :  { %v478_v58 = vadd.f32 %v476_v56, %v475_v54  ;;  %v484_v60 = vmul.f32 %v476_v56, %v476_v56 }
 0x140   :  { %v479_v61 = vadd.f32 %v478_v58, %v477_v57  ;;  %v486_v62 = vadd.f32 %v484_v60, %v483_v59 }
 0x142   :  { %480 = vadd.xlane.f32.xlu0 %v479_v61  ;;  %v487_v1 = vadd.f32 %v486_v62, %v485_v63 }
 0x146   :  { %488 = vadd.xlane.f32.xlu0 %v487_v1 }
 0x1cb   :  { %v481_v2 = vpop.xlane.xlu0 %480 }
 0x1cc   :  { %v482_v3 = vmul.f32 0.010416667, %v481_v2 }
 0x1ce   :  { %v491_v5 = vmul.f32 %v482_v3, %v482_v3  ;;  %v494_v14 = vsub.f32 %v475_v54, %v482_v3  ;;  %v496_v15 = vsub.f32 %v477_v57, %v482_v3  ;;  %v495_v30 = vsub.f32 %v476_v56, %v482_v3 }
 0x1cf   :  { %v489_v4 = vpop.xlane.xlu0 %488 }
 0x1d0   :  { %v490_v6 = vmul.f32 0.010416667, %v489_v4 }
 0x1d2   :  { %v492_v7 = vsub.f32 %v490_v6, %v491_v5 }
 0x1d4   :  { %v493_v8 = vmax.f32 %v492_v7, 0.0 }
 0x1d6   :  { %v497_v9 = vadd.f32 1e-05, %v493_v8 }
 0x1d8   :  { %695 = vrsqrt.f32 %v497_v9 }
 0x1e5   :  { %v696_v16 = vpop.eup %695 }
 0x1e6   :  { %v499_v19 = vmul.f32 %v696_v16, %v494_v14  ;;  %v501_v20 = vmul.f32 %v696_v16, %v496_v15  ;;  %v500_v33 = vmul.f32 %v696_v16, %v495_v30 }
 0x1e8   :  { %v519_v21 = vmul.f32 %v507_v13, %v499_v19  ;;  %v521_v22 = vmul.f32 %v515_v12, %v501_v20  ;;  %v520_v37 = vmul.f32 %v511_v32, %v500_v33 }
 0x1ea   :  { %v539_v23 = vadd.f32 %v527_v18, %v519_v21  ;;  %v541_v24 = vadd.f32 %v535_v17, %v521_v22  ;;  %v540_v38 = vadd.f32 %v531_v36, %v520_v37 }
 0x1ec   :  { %v579_v25 = vmul.f32 -1.442695, %v539_v23  ;;  %v580_v26 = vadd.f32 -1.0, %v541_v24 }
 0x1ee   :  { %697 = vpow2.f32 %v579_v25  ;;  %v581_v27 = vmul.f32 -1.442695, %v580_v26 }
 0x1f0   :  { %699 = vpow2.f32 %v581_v27 }
 0x1fb   :  { %v698_v28 = vpop.eup %697 }
 0x1fc   :  { %v545_v29 = vadd.f32 1.0, %v698_v28 }
 0x1fd   :  { %v700_v31 = vpop.eup %699 }
 0x1fe   :  { %701 = vrcp.f32 %v545_v29  ;;  %v554_v34 = vadd.f32 1.0, %v700_v31 }
 0x200   :  { %703 = vrcp.f32 %v554_v34 }
 0x20b   :  { %v702_v39 = vpop.eup %701 }
 0x20c   :  { %v548_v40 = vmul.f32 %v702_v39, %v540_v38 }
 0x20d   :  { %v704_v41 = vpop.eup %703 }
 0x20e   :  { %705 = vtanh.f32 %v548_v40  ;;  %v558_v42 = vsub.f32 1.0, %v704_v41 }
 0x210   :  { %v559_v46 = vmul.f32 %v558_v42, %v911_v35 }
 0x21b   :  { %v706_v44 = vpop.eup %705 }
 0x21c   :  { %v557_v45 = vmul.f32 %v706_v44, %v704_v41 }
 0x21e   :  { %v560_v0 = vadd.f32 %v559_v46, %v557_v45 }
 0x220   :  { %561 = vst [vmem:[#allocation10] sm:$0xff] %v560_v0 }
 0x221   :  { %798 = shalt.err (!%p795_p10)
}
 0x222   :  { %571 = dma.vmem_to_hbm [thread:$0]  %s569_s6, 128, %s943_s7, [#allocation4]  }
 0x223   :  { %813 = dma.done.wait [#allocation4], 128  }
 0x224   :  { %814 = vsyncadd [#allocation4], 4294967168 }
 0x225   :  { %575 = vsyncpa [#allocation3], 1 }
 0x226   :  { %576 = vsyncpa [#allocation6], 1 }
 0x227   :  { %577 = vsyncpa [#allocation9], 1 }
 0x228   :  { %578 = vsyncpa [#allocation4], 1 }

// kernel: tpu_custom_call.1
= control target key start
LH: loop header
LB: loop body
LE: loop exit
PB: predicated region body
PF: predicated region fallthrough
CT: control target
= control target key end

     0   :  { %12 = vsyncpa [#allocation3], 0  ;;  %s936_s0 = inlined_call_operand.hbm [shape: f32[8,128], index: 0, kind: input, shape index: {}]   ;;  %s937_s1 = inlined_call_operand.hbm [shape: f32[8,128], index: 1, kind: input, shape index: {}]   ;;  %s938_s2 = inlined_call_operand.hbm [shape: f32[128,384], index: 2, kind: input, shape index: {}]   ;;  %s939_s3 = inlined_call_operand.hbm [shape: f32[128,384], index: 3, kind: input, shape index: {}]   ;;  %s940_s4 = inlined_call_operand.vmem [shape: f32[1,384], index: 4, kind: input, shape index: {}]   ;;  %s941_s5 = inlined_call_operand.vmem [shape: f32[1,384], index: 5, kind: input, shape index: {}]   ;;  %s942_s6 = inlined_call_operand.vmem [shape: f32[1,384], index: 6, kind: input, shape index: {}]   ;;  %s943_s7 = inlined_call_operand.hbm [shape: f32[8,128], index: 7, kind: output, shape index: {}]  }
   0x1   :  { %13 = vsyncpa [#allocation6], 0 }
   0x2   :  { %14 = vsyncpa [#allocation9], 0 }
   0x3   :  { %15 = vsyncpa [#allocation4], 0  ;;  %s815_s24 = smov [#allocation5]   ;;  %s816_s26 = smov [#allocation2]  }
   0x4   :  { %s32_s25 = sshll.u32 %s815_s24, 4  ;;  %s22_s27 = sshll.u32 %s816_s26, 4  ;;  %s33_s25 = int_to_ptr.vmem [resolvable:$true] %s32_s25  ;;  %s23_s27 = int_to_ptr.vmem [resolvable:$true] %s22_s27 }
   0x5   :  { %s715_s28 = scalar_lea.vmem %s33_s25, 128  ;;  %p720_p1 = scmp.lt.s32.totalorder %s33_s25, %s33_s25 }
   0x6   :  { %p716_p0 = scmp.ne.s32.totalorder %s33_s25, %s715_s28  ;;  %p721_p2 = scmp.lt.s32.totalorder %s715_s28, %s715_s28 }
   0x8   :  { %p722_p3 = por %p721_p2, %p720_p1 }
   0xa   :  { %p723_p4 = pnand %p722_p3, %p716_p0 }
   0xc   :  { %726 = shalt.err (!%p723_p4)
}
   0xd   :  { %35 = dma.hbm_to_vmem [thread:$0]  %s937_s1, 128, %s33_s25, [#allocation6]  }
   0xe   :  { %s735_s8 = scalar_lea.vmem %s23_s27, 128  ;;  %p740_p6 = scmp.lt.s32.totalorder %s23_s27, %s23_s27 }
   0xf   :  { %p736_p5 = scmp.ne.s32.totalorder %s23_s27, %s735_s8  ;;  %p741_p7 = scmp.lt.s32.totalorder %s735_s8, %s735_s8 }
  0x11   :  { %p742_p8 = por %p741_p7, %p740_p6 }
  0x13   :  { %p743_p9 = pnand %p742_p8, %p736_p5 }
  0x15   :  { %746 = shalt.err (!%p743_p9)
}
  0x16   :  { %25 = dma.hbm_to_vmem [thread:$0]  %s936_s0, 128, %s23_s27, [#allocation3]  }
  0x17   :  { %s817_s11 = smov [#allocation7]  }
  0x18   :  { %s41_s12 = sshll.u32 %s817_s11, 4  ;;  %s42_s12 = int_to_ptr.vmem [resolvable:$true] %s41_s12 }
  0x19   :  { %s755_s13 = scalar_lea.vmem %s42_s12, 6144  ;;  %p760_p11 = scmp.lt.s32.totalorder %s42_s12, %s42_s12 }
  0x1a   :  { %p756_p10 = scmp.ne.s32.totalorder %s42_s12, %s755_s13  ;;  %p761_p12 = scmp.lt.s32.totalorder %s755_s13, %s755_s13 }
  0x1c   :  { %p762_p13 = por %p761_p12, %p760_p11 }
  0x1e   :  { %p763_p0 = pnand %p762_p13, %p756_p10 }
  0x20   :  { %766 = shalt.err (!%p763_p0)
}
  0x21   :  { %s818_s1 = smov 384   ;;  %s819_s14 = smov 24  }
  0x22   :  { %47 = dma.hbm_to_vmem [thread:$0]  %s938_s2, 6144, %s42_s12, [#allocation6], %s818_s1, %s818_s1, %s819_s14  }
  0x23   :  { %s820_s17 = smov [#allocation8]  }
  0x24   :  { %s53_s18 = sshll.u32 %s820_s17, 4  ;;  %s54_s18 = int_to_ptr.vmem [resolvable:$true] %s53_s18 }
  0x25   :  { %s775_s0 = scalar_lea.vmem %s54_s18, 6144  ;;  %p780_p2 = scmp.lt.s32.totalorder %s54_s18, %s54_s18 }
  0x26   :  { %p776_p1 = scmp.ne.s32.totalorder %s54_s18, %s775_s0  ;;  %p781_p3 = scmp.lt.s32.totalorder %s775_s0, %s775_s0 }
  0x28   :  { %p782_p4 = por %p781_p3, %p780_p2 }
  0x2a   :  { %p783_p5 = pnand %p782_p4, %p776_p1 }
  0x2c   :  { %786 = shalt.err (!%p783_p5)
}
  0x2d   :  { %59 = dma.hbm_to_vmem [thread:$0]  %s939_s3, 6144, %s54_s18, [#allocation9], %s818_s1, %s818_s1, %s819_s14  }
  0x2e   :  { %807 = dma.done.wait [#allocation3], 128  }
  0x2f   :  { %808 = vsyncadd [#allocation3], 4294967168 }
  0x30   :  { %809 = dma.done.wait [#allocation6], 6272  }
  0x31   :  { %810 = vsyncadd [#allocation6], 4294961024 }
  0x32   :  { %811 = dma.done.wait [#allocation9], 6144  }
  0x33   :  { %812 = vsyncadd [#allocation9], 4294961152  ;;  %v821_v0 = vmov 0.0   ;;  %vm822_vm0 = vmmov 0   ;;  %v174_v1 = vld [vmem:[#allocation7 + $0x170] sm:$0xff]  ;;  %v175_v2 = vld [vmem:[#allocation7 + $0x178] sm:$0xff] }
  0x34   :  { %616 = vmatprep.subr.mxu1 %v821_v0  ;;  %240 = vmatprep.mubr.f32.mxu0 %v821_v0  ;;  %v173_v3 = vld [vmem:[#allocation7 + $0x168] sm:$0xff]  ;;  %v171_v4 = vld [vmem:[#allocation7 + $0x158] sm:$0xff]  ;;  %v172_v5 = vld [vmem:[#allocation7 + $0x160] sm:$0xff] }
  0x35   :  { %648 = vmatprep.mubr.msk.f32.mxu1 %vm822_vm0, %v821_v0  ;;  %176 = vmatprep.subr.mxu0 %v174_v1  ;;  %v170_v6 = vld [vmem:[#allocation7 + $0x150] sm:$0xff]  ;;  %v168_v7 = vld [vmem:[#allocation7 + $0x140] sm:$0xff]  ;;  %v169_v8 = vld [vmem:[#allocation7 + $0x148] sm:$0xff] }
  0x36   :  { %617 = vmatpush3.msra.mxu1 %v175_v2  ;;  %177 = vmatpush1.msra.mxu0 %v173_v3  ;;  %v167_v9 = vld [vmem:[#allocation7 + $0x138] sm:$0xff]  ;;  %v165_v10 = vld [vmem:[#allocation7 + $0x128] sm:$0xff]  ;;  %v166_v11 = vld [vmem:[#allocation7 + $0x130] sm:$0xff] }
  0x37   :  { %618 = vmatprep.subr.mxu1 %v821_v0  ;;  %178 = vmatprep.subr.mxu0 %v171_v4  ;;  %v164_v12 = vld [vmem:[#allocation7 + $0x120] sm:$0xff]  ;;  %v162_v13 = vld [vmem:[#allocation7 + $0x110] sm:$0xff]  ;;  %v163_v14 = vld [vmem:[#allocation7 + $0x118] sm:$0xff] }
  0x38   :  { %619 = vmatpush3.msra.mxu1 %v172_v5  ;;  %179 = vmatpush1.msra.mxu0 %v170_v6  ;;  %v161_v15 = vld [vmem:[#allocation7 + $0x108] sm:$0xff]  ;;  %v159_v16 = vld [vmem:[#allocation7 + $0xf8] sm:$0xff]  ;;  %v160_v17 = vld [vmem:[#allocation7 + $0x100] sm:$0xff] }
  0x39   :  { %620 = vmatprep.subr.mxu1 %v821_v0  ;;  %180 = vmatprep.subr.mxu0 %v168_v7  ;;  %v158_v18 = vld [vmem:[#allocation7 + $0xf0] sm:$0xff]  ;;  %v156_v19 = vld [vmem:[#allocation7 + $0xe0] sm:$0xff]  ;;  %v157_v20 = vld [vmem:[#allocation7 + $0xe8] sm:$0xff] }
  0x3a   :  { %621 = vmatpush3.msra.mxu1 %v169_v8  ;;  %181 = vmatpush1.msra.mxu0 %v167_v9  ;;  %v155_v21 = vld [vmem:[#allocation7 + $0xd8] sm:$0xff]  ;;  %v153_v22 = vld [vmem:[#allocation7 + $0xc8] sm:$0xff]  ;;  %v154_v23 = vld [vmem:[#allocation7 + $0xd0] sm:$0xff] }
  0x3b   :  { %622 = vmatprep.subr.mxu1 %v821_v0  ;;  %182 = vmatprep.subr.mxu0 %v165_v10  ;;  %v152_v24 = vld [vmem:[#allocation7 + $0xc0] sm:$0xff]  ;;  %v150_v25 = vld [vmem:[#allocation7 + $0xb0] sm:$0xff]  ;;  %v151_v26 = vld [vmem:[#allocation7 + $0xb8] sm:$0xff] }
  0x3c   :  { %623 = vmatpush3.msra.mxu1 %v166_v11  ;;  %183 = vmatpush1.msra.mxu0 %v164_v12  ;;  %v149_v27 = vld [vmem:[#allocation7 + $0xa8] sm:$0xff]  ;;  %v147_v28 = vld [vmem:[#allocation7 + $0x98] sm:$0xff]  ;;  %v148_v29 = vld [vmem:[#allocation7 + $0xa0] sm:$0xff] }
  0x3d   :  { %624 = vmatprep.subr.mxu1 %v821_v0  ;;  %184 = vmatprep.subr.mxu0 %v162_v13  ;;  %v146_v30 = vld [vmem:[#allocation7 + $0x90] sm:$0xff]  ;;  %v144_v31 = vld [vmem:[#allocation7 + $0x80] sm:$0xff]  ;;  %v145_v32 = vld [vmem:[#allocation7 + $0x88] sm:$0xff] }
  0x3e   :  { %625 = vmatpush3.msra.mxu1 %v163_v14  ;;  %185 = vmatpush1.msra.mxu0 %v161_v15  ;;  %v143_v33 = vld [vmem:[#allocation7 + $0x78] sm:$0xff]  ;;  %v141_v34 = vld [vmem:[#allocation7 + $0x68] sm:$0xff]  ;;  %v142_v35 = vld [vmem:[#allocation7 + $0x70] sm:$0xff] }
  0x3f   :  { %626 = vmatprep.subr.mxu1 %v821_v0  ;;  %186 = vmatprep.subr.mxu0 %v159_v16  ;;  %v140_v36 = vld [vmem:[#allocation7 + $0x60] sm:$0xff]  ;;  %v138_v37 = vld [vmem:[#allocation7 + $0x50] sm:$0xff]  ;;  %v139_v38 = vld [vmem:[#allocation7 + $0x58] sm:$0xff] }
  0x40   :  { %627 = vmatpush3.msra.mxu1 %v160_v17  ;;  %187 = vmatpush1.msra.mxu0 %v158_v18  ;;  %v137_v39 = vld [vmem:[#allocation7 + $0x48] sm:$0xff]  ;;  %v135_v40 = vld [vmem:[#allocation7 + $0x38] sm:$0xff]  ;;  %v136_v41 = vld [vmem:[#allocation7 + $0x40] sm:$0xff] }
  0x41   :  { %628 = vmatprep.subr.mxu1 %v821_v0  ;;  %188 = vmatprep.subr.mxu0 %v156_v19  ;;  %v134_v42 = vld [vmem:[#allocation7 + $0x30] sm:$0xff]  ;;  %v132_v43 = vld [vmem:[#allocation7 + $0x20] sm:$0xff]  ;;  %v133_v44 = vld [vmem:[#allocation7 + $0x28] sm:$0xff] }
  0x42   :  { %629 = vmatpush3.msra.mxu1 %v157_v20  ;;  %189 = vmatpush1.msra.mxu0 %v155_v21  ;;  %v131_v45 = vld [vmem:[#allocation7 + $0x18] sm:$0xff]  ;;  %v129_v46 = vld [vmem:[#allocation7 + $0x8] sm:$0xff]  ;;  %v130_v47 = vld [vmem:[#allocation7 + $0x10] sm:$0xff] }
  0x43   :  { %630 = vmatprep.subr.mxu1 %v821_v0  ;;  %190 = vmatprep.subr.mxu0 %v153_v22  ;;  %v128_v48 = vld [vmem:[#allocation7] sm:$0xff]  ;;  %v127_v49 = vld [vmem:[#allocation2] sm:$0xff]  ;;  %v126_v51 = vld [vmem:[#allocation8 + $0x178] sm:$0xff] }
  0x44   :  { %631 = vmatpush3.msra.mxu1 %v154_v23  ;;  %191 = vmatpush1.msra.mxu0 %v152_v24  ;;  %v125_v50 = vld [vmem:[#allocation8 + $0x170] sm:$0xff]  ;;  %v124_v52 = vld [vmem:[#allocation8 + $0x168] sm:$0xff]  ;;  %v122_v53 = vld [vmem:[#allocation8 + $0x158] sm:$0xff] }
  0x45   :  { %632 = vmatprep.subr.mxu1 %v821_v0  ;;  %192 = vmatprep.subr.mxu0 %v150_v25  ;;  %v123_v54 = vld [vmem:[#allocation8 + $0x160] sm:$0xff]  ;;  %v121_v55 = vld [vmem:[#allocation8 + $0x150] sm:$0xff]  ;;  %v120_v57 = vld [vmem:[#allocation8 + $0x148] sm:$0xff] }
  0x46   :  { %633 = vmatpush3.msra.mxu1 %v151_v26  ;;  %193 = vmatpush1.msra.mxu0 %v149_v27  ;;  %v119_v56 = vld [vmem:[#allocation8 + $0x140] sm:$0xff]  ;;  %v118_v58 = vld [vmem:[#allocation8 + $0x138] sm:$0xff]  ;;  %v116_v59 = vld [vmem:[#allocation8 + $0x128] sm:$0xff] }
  0x47   :  { %634 = vmatprep.subr.mxu1 %v821_v0  ;;  %194 = vmatprep.subr.mxu0 %v147_v28  ;;  %v117_v60 = vld [vmem:[#allocation8 + $0x130] sm:$0xff]  ;;  %v115_v61 = vld [vmem:[#allocation8 + $0x120] sm:$0xff]  ;;  %v114_v63 = vld [vmem:[#allocation8 + $0x118] sm:$0xff] }
  0x48   :  { %635 = vmatpush3.msra.mxu1 %v148_v29  ;;  %195 = vmatpush1.msra.mxu0 %v146_v30  ;;  %v113_v62 = vld [vmem:[#allocation8 + $0x110] sm:$0xff]  ;;  %v112_v1 = vld [vmem:[#allocation8 + $0x108] sm:$0xff]  ;;  %v110_v2 = vld [vmem:[#allocation8 + $0xf8] sm:$0xff] }
  0x49   :  { %636 = vmatprep.subr.mxu1 %v821_v0  ;;  %196 = vmatprep.subr.mxu0 %v144_v31  ;;  %v111_v3 = vld [vmem:[#allocation8 + $0x100] sm:$0xff]  ;;  %v109_v4 = vld [vmem:[#allocation8 + $0xf0] sm:$0xff]  ;;  %v108_v6 = vld [vmem:[#allocation8 + $0xe8] sm:$0xff] }
  0x4a   :  { %637 = vmatpush3.msra.mxu1 %v145_v32  ;;  %197 = vmatpush1.msra.mxu0 %v143_v33  ;;  %v107_v5 = vld [vmem:[#allocation8 + $0xe0] sm:$0xff]  ;;  %v106_v7 = vld [vmem:[#allocation8 + $0xd8] sm:$0xff]  ;;  %v104_v8 = vld [vmem:[#allocation8 + $0xc8] sm:$0xff] }
  0x4b   :  { %638 = vmatprep.subr.mxu1 %v821_v0  ;;  %198 = vmatprep.subr.mxu0 %v141_v34  ;;  %v105_v9 = vld [vmem:[#allocation8 + $0xd0] sm:$0xff]  ;;  %v103_v10 = vld [vmem:[#allocation8 + $0xc0] sm:$0xff]  ;;  %v102_v12 = vld [vmem:[#allocation8 + $0xb8] sm:$0xff] }
  0x4c   :  { %639 = vmatpush3.msra.mxu1 %v142_v35  ;;  %199 = vmatpush1.msra.mxu0 %v140_v36  ;;  %v101_v11 = vld [vmem:[#allocation8 + $0xb0] sm:$0xff]  ;;  %v100_v13 = vld [vmem:[#allocation8 + $0xa8] sm:$0xff]  ;;  %v98_v14 = vld [vmem:[#allocation8 + $0x98] sm:$0xff] }
  0x4d   :  { %640 = vmatprep.subr.mxu1 %v821_v0  ;;  %200 = vmatprep.subr.mxu0 %v138_v37  ;;  %v99_v15 = vld [vmem:[#allocation8 + $0xa0] sm:$0xff]  ;;  %v97_v16 = vld [vmem:[#allocation8 + $0x90] sm:$0xff]  ;;  %v96_v18 = vld [vmem:[#allocation8 + $0x88] sm:$0xff] }
  0x4e   :  { %641 = vmatpush3.msra.mxu1 %v139_v38  ;;  %201 = vmatpush1.msra.mxu0 %v137_v39  ;;  %v95_v17 = vld [vmem:[#allocation8 + $0x80] sm:$0xff]  ;;  %v94_v19 = vld [vmem:[#allocation8 + $0x78] sm:$0xff]  ;;  %v92_v20 = vld [vmem:[#allocation8 + $0x68] sm:$0xff]  ;;  %v460_v38 = vlaneseq }
  0x4f   :  { %642 = vmatprep.subr.mxu1 %v821_v0  ;;  %202 = vmatprep.subr.mxu0 %v135_v40  ;;  %v93_v21 = vld [vmem:[#allocation8 + $0x70] sm:$0xff]  ;;  %v91_v22 = vld [vmem:[#allocation8 + $0x60] sm:$0xff]  ;;  %v90_v24 = vld [vmem:[#allocation8 + $0x58] sm:$0xff] }
  0x50   :  { %643 = vmatpush3.msra.mxu1 %v136_v41  ;;  %203 = vmatpush1.msra.mxu0 %v134_v42  ;;  %v89_v23 = vld [vmem:[#allocation8 + $0x50] sm:$0xff]  ;;  %v88_v25 = vld [vmem:[#allocation8 + $0x48] sm:$0xff]  ;;  %v86_v26 = vld [vmem:[#allocation8 + $0x38] sm:$0xff]  ;;  %v461_v39 = vshrl.u32 %v460_v38, 7 }
  0x51   :  { %644 = vmatprep.subr.mxu1 %v821_v0  ;;  %204 = vmatprep.subr.mxu0 %v132_v43  ;;  %v87_v27 = vld [vmem:[#allocation8 + $0x40] sm:$0xff]  ;;  %v85_v28 = vld [vmem:[#allocation8 + $0x30] sm:$0xff]  ;;  %v84_v30 = vld [vmem:[#allocation8 + $0x28] sm:$0xff] }
  0x52   :  { %645 = vmatpush3.msra.mxu1 %v133_v44  ;;  %205 = vmatpush1.msra.mxu0 %v131_v45  ;;  %v83_v29 = vld [vmem:[#allocation8 + $0x20] sm:$0xff]  ;;  %v82_v31 = vld [vmem:[#allocation8 + $0x18] sm:$0xff]  ;;  %v80_v32 = vld [vmem:[#allocation8 + $0x8] sm:$0xff]  ;;  %v462_v41 = vsub.s32 0, %v461_v39  ;;  %v921_v43 = vsub.s32 1, %v461_v39 }
  0x53   :  { %646 = vmatprep.subr.mxu1 %v821_v0  ;;  %206 = vmatprep.subr.mxu0 %v129_v46  ;;  %v81_v33 = vld [vmem:[#allocation8 + $0x10] sm:$0xff]  ;;  %v79_v34 = vld [vmem:[#allocation8] sm:$0xff]  ;;  %v911_v35 = vld [vmem:[#allocation5] sm:$0xff]  ;;  %v470_v46 = vsub.s32 2, %v461_v39 }
  0x54   :  { %647 = vmatpush3.msra.mxu1 %v130_v47  ;;  %207 = vmatpush1.msra.mxu0 %v128_v48  ;;  %v458_v42 = vld [vmem:[%s940_s4] sm:$0x7] }
  0x55   :  { %651 = vmatprep.subr.mxu1 %v821_v0  ;;  %241 = vmatmul.mubr.f32.vlgmr.msra.gmra.mxu0 %v127_v49 }
  0x56   :  { %649 = vmatmul.mubr.f32.vlgmr.msra.gmra.mxu1 %v127_v49  ;;  %317 = vmatprep.subr.mxu0 %v125_v50  ;;  %v467_v49 = vrot.slane %v458_v42, %v921_v43 }
  0x57   :  { %652 = vmatpush3.msra.mxu1 %v126_v51  ;;  %318 = vmatpush1.msra.mxu0 %v124_v52 }
  0x58   :  { %653 = vmatprep.subr.mxu1 %v821_v0  ;;  %319 = vmatprep.subr.mxu0 %v122_v53  ;;  %v471_v53 = vrot.slane %v458_v42, %v470_v46 }
  0x59   :  { %654 = vmatpush3.msra.mxu1 %v123_v54  ;;  %320 = vmatpush1.msra.mxu0 %v121_v55 }
  0x5a   :  { %655 = vmatprep.subr.mxu1 %v821_v0  ;;  %321 = vmatprep.subr.mxu0 %v119_v56 }
  0x5b   :  { %656 = vmatpush3.msra.mxu1 %v120_v57  ;;  %322 = vmatpush1.msra.mxu0 %v118_v58 }
  0x5c   :  { %657 = vmatprep.subr.mxu1 %v821_v0  ;;  %323 = vmatprep.subr.mxu0 %v116_v59 }
  0x5d   :  { %658 = vmatpush3.msra.mxu1 %v117_v60  ;;  %324 = vmatpush1.msra.mxu0 %v115_v61 }
  0x5e   :  { %659 = vmatprep.subr.mxu1 %v821_v0  ;;  %325 = vmatprep.subr.mxu0 %v113_v62 }
  0x5f   :  { %660 = vmatpush3.msra.mxu1 %v114_v63  ;;  %326 = vmatpush1.msra.mxu0 %v112_v1 }
  0x60   :  { %661 = vmatprep.subr.mxu1 %v821_v0  ;;  %327 = vmatprep.subr.mxu0 %v110_v2 }
  0x61   :  { %662 = vmatpush3.msra.mxu1 %v111_v3  ;;  %328 = vmatpush1.msra.mxu0 %v109_v4 }
  0x62   :  { %663 = vmatprep.subr.mxu1 %v821_v0  ;;  %329 = vmatprep.subr.mxu0 %v107_v5 }
  0x63   :  { %664 = vmatpush3.msra.mxu1 %v108_v6  ;;  %330 = vmatpush1.msra.mxu0 %v106_v7 }
  0x64   :  { %665 = vmatprep.subr.mxu1 %v821_v0  ;;  %331 = vmatprep.subr.mxu0 %v104_v8 }
  0x65   :  { %666 = vmatpush3.msra.mxu1 %v105_v9  ;;  %332 = vmatpush1.msra.mxu0 %v103_v10  ;;  %v502_v10 = vld [vmem:[%s941_s5] sm:$0x7]  ;;  %s823_s5 = smov [#allocation10]  }
  0x66   :  { %667 = vmatprep.subr.mxu1 %v821_v0  ;;  %333 = vmatprep.subr.mxu0 %v101_v11  ;;  %v522_v11 = vld [vmem:[%s942_s6] sm:$0x7]  ;;  %s568_s6 = sshll.u32 %s823_s5, 4  ;;  %s569_s6 = int_to_ptr.vmem [resolvable:$true] %s568_s6 }
  0x67   :  { %668 = vmatpush3.msra.mxu1 %v102_v12  ;;  %334 = vmatpush1.msra.mxu0 %v100_v13  ;;  %v515_v12 = vrot.slane %v502_v10, %v470_v46  ;;  %v507_v13 = vrot.slane %v502_v10, %v462_v41  ;;  %s787_s24 = scalar_lea.vmem %s569_s6, 128  ;;  %p792_p7 = scmp.lt.s32.totalorder %s569_s6, %s569_s6 }
  0x68   :  { %669 = vmatprep.subr.mxu1 %v821_v0  ;;  %335 = vmatprep.subr.mxu0 %v98_v14  ;;  %p788_p6 = scmp.ne.s32.totalorder %s569_s6, %s787_s24  ;;  %p793_p8 = scmp.lt.s32.totalorder %s787_s24, %s787_s24 }
  0x69   :  { %670 = vmatpush3.msra.mxu1 %v99_v15  ;;  %336 = vmatpush1.msra.mxu0 %v97_v16 }
  0x6a   :  { %671 = vmatprep.subr.mxu1 %v821_v0  ;;  %337 = vmatprep.subr.mxu0 %v95_v17  ;;  %v535_v17 = vrot.slane %v522_v11, %v470_v46  ;;  %p794_p9 = por %p793_p8, %p792_p7 }
  0x6b   :  { %672 = vmatpush3.msra.mxu1 %v96_v18  ;;  %338 = vmatpush1.msra.mxu0 %v94_v19  ;;  %v527_v18 = vrot.slane %v522_v11, %v462_v41 }
  0x6c   :  { %673 = vmatprep.subr.mxu1 %v821_v0  ;;  %339 = vmatprep.subr.mxu0 %v92_v20  ;;  %p795_p10 = pnand %p794_p9, %p788_p6 }
  0x6d   :  { %674 = vmatpush3.msra.mxu1 %v93_v21  ;;  %340 = vmatpush1.msra.mxu0 %v91_v22 }
  0x6e   :  { %675 = vmatprep.subr.mxu1 %v821_v0  ;;  %341 = vmatprep.subr.mxu0 %v89_v23 }
  0x6f   :  { %676 = vmatpush3.msra.mxu1 %v90_v24  ;;  %342 = vmatpush1.msra.mxu0 %v88_v25 }
  0x70   :  { %677 = vmatprep.subr.mxu1 %v821_v0  ;;  %343 = vmatprep.subr.mxu0 %v86_v26 }
  0x71   :  { %678 = vmatpush3.msra.mxu1 %v87_v27  ;;  %344 = vmatpush1.msra.mxu0 %v85_v28 }
  0x72   :  { %679 = vmatprep.subr.mxu1 %v821_v0  ;;  %345 = vmatprep.subr.mxu0 %v83_v29 }
  0x73   :  { %680 = vmatpush3.msra.mxu1 %v84_v30  ;;  %346 = vmatpush1.msra.mxu0 %v82_v31 }
  0x74   :  { %681 = vmatprep.subr.mxu1 %v821_v0  ;;  %347 = vmatprep.subr.mxu0 %v80_v32  ;;  %v511_v32 = vrot.slane %v502_v10, %v921_v43 }
  0x75   :  { %682 = vmatpush3.msra.mxu1 %v81_v33  ;;  %683 = vmatprep.mubr.msk.f32.mxu1 %vm822_vm0, %v821_v0 }
  0x76   :  { %348 = vmatpush1.msra.mxu0 %v79_v34  ;;  %381 = vmatprep.mubr.f32.mxu0 %v821_v0  ;;  %v463_v0 = vrot.slane %v458_v42, %v462_v41 }
  0x77   :  { %684 = vmatmul.mubr.f32.vlgmr.msra.gmra.mxu1 %v911_v35  ;;  %382 = vmatmul.mubr.f32.vlgmr.msra.gmra.mxu0 %v911_v35 }
 0x115   :  { %v242_v40 = vpop.f32.mrf.mxu0 }
 0x116   :  { %v313_v36 = vpop.f32.mrf.mxu1 }
 0x117   :  { %v244_v44 = vpop.f32.mrf.mxu0 }
 0x118   :  { %v650_v37 = vpop.f32.mrf.mxu1 }
 0x137   :  { %v454_v45 = vpop.f32.mrf.mxu1  ;;  %v383_v47 = vpop.f32.mrf.mxu0 }
 0x138   :  { %v384_v48 = vadd.f32 %v383_v47, %v242_v40  ;;  %v455_v52 = vadd.f32 %v454_v45, %v313_v36  ;;  %v531_v36 = vrot.slane %v522_v11, %v921_v43 }
 0x139   :  { %v685_v50 = vpop.f32.mrf.mxu1  ;;  %v385_v51 = vpop.f32.mrf.mxu0 }
 0x13a   :  { %v475_v54 = vadd.f32 %v463_v0, %v384_v48  ;;  %v386_v55 = vadd.f32 %v385_v51, %v244_v44  ;;  %v477_v57 = vadd.f32 %v471_v53, %v455_v52 }
 0x13c   :  { %v476_v56 = vadd.f32 %v467_v49, %v386_v55  ;;  %v483_v59 = vmul.f32 %v475_v54, %v475_v54  ;;  %v485_v63 = vmul.f32 %v477_v57, %v477_v57 }
 0x13e   :  { %v478_v58 = vadd.f32 %v476_v56, %v475_v54  ;;  %v484_v60 = vmul.f32 %v476_v56, %v476_v56 }
 0x140   :  { %v479_v61 = vadd.f32 %v478_v58, %v477_v57  ;;  %v486_v62 = vadd.f32 %v484_v60, %v483_v59 }
 0x142   :  { %480 = vadd.xlane.f32.xlu0 %v479_v61  ;;  %v487_v1 = vadd.f32 %v486_v62, %v485_v63 }
 0x146   :  { %488 = vadd.xlane.f32.xlu0 %v487_v1 }
 0x1cb   :  { %v481_v2 = vpop.xlane.xlu0 %480 }
 0x1cc   :  { %v482_v3 = vmul.f32 0.010416667, %v481_v2 }
 0x1ce   :  { %v491_v5 = vmul.f32 %v482_v3, %v482_v3  ;;  %v494_v14 = vsub.f32 %v475_v54, %v482_v3  ;;  %v496_v15 = vsub.f32 %v477_v57, %v482_v3  ;;  %v495_v30 = vsub.f32 %v476_v56, %v482_v3 }
 0x1cf   :  { %v489_v4 = vpop.xlane.xlu0 %488 }
 0x1d0   :  { %v490_v6 = vmul.f32 0.010416667, %v489_v4 }
 0x1d2   :  { %v492_v7 = vsub.f32 %v490_v6, %v491_v5 }
 0x1d4   :  { %v493_v8 = vmax.f32 %v492_v7, 0.0 }
 0x1d6   :  { %v497_v9 = vadd.f32 1e-05, %v493_v8 }
 0x1d8   :  { %695 = vrsqrt.f32 %v497_v9 }
 0x1e5   :  { %v696_v16 = vpop.eup %695 }
 0x1e6   :  { %v499_v19 = vmul.f32 %v696_v16, %v494_v14  ;;  %v501_v20 = vmul.f32 %v696_v16, %v496_v15  ;;  %v500_v33 = vmul.f32 %v696_v16, %v495_v30 }
 0x1e8   :  { %v519_v21 = vmul.f32 %v507_v13, %v499_v19  ;;  %v521_v22 = vmul.f32 %v515_v12, %v501_v20  ;;  %v520_v37 = vmul.f32 %v511_v32, %v500_v33 }
 0x1ea   :  { %v539_v23 = vadd.f32 %v527_v18, %v519_v21  ;;  %v541_v24 = vadd.f32 %v535_v17, %v521_v22  ;;  %v540_v38 = vadd.f32 %v531_v36, %v520_v37 }
 0x1ec   :  { %v579_v25 = vmul.f32 -1.442695, %v539_v23  ;;  %v580_v26 = vadd.f32 -1.0, %v541_v24 }
 0x1ee   :  { %697 = vpow2.f32 %v579_v25  ;;  %v581_v27 = vmul.f32 -1.442695, %v580_v26 }
 0x1f0   :  { %699 = vpow2.f32 %v581_v27 }
 0x1fb   :  { %v698_v28 = vpop.eup %697 }
 0x1fc   :  { %v545_v29 = vadd.f32 1.0, %v698_v28 }
 0x1fd   :  { %v700_v31 = vpop.eup %699 }
 0x1fe   :  { %701 = vrcp.f32 %v545_v29  ;;  %v554_v34 = vadd.f32 1.0, %v700_v31 }
 0x200   :  { %703 = vrcp.f32 %v554_v34 }
 0x20b   :  { %v702_v39 = vpop.eup %701 }
 0x20c   :  { %v548_v40 = vmul.f32 %v702_v39, %v540_v38 }
 0x20d   :  { %v704_v41 = vpop.eup %703 }
 0x20e   :  { %705 = vtanh.f32 %v548_v40  ;;  %v558_v42 = vsub.f32 1.0, %v704_v41 }
 0x210   :  { %v559_v46 = vmul.f32 %v558_v42, %v911_v35 }
 0x21b   :  { %v706_v44 = vpop.eup %705 }
 0x21c   :  { %v557_v45 = vmul.f32 %v706_v44, %v704_v41 }
 0x21e   :  { %v560_v0 = vadd.f32 %v559_v46, %v557_v45 }
 0x220   :  { %561 = vst [vmem:[#allocation10] sm:$0xff] %v560_v0 }
 0x221   :  { %798 = shalt.err (!%p795_p10)
}
 0x222   :  { %571 = dma.vmem_to_hbm [thread:$0]  %s569_s6, 128, %s943_s7, [#allocation4]  }
 0x223   :  { %813 = dma.done.wait [#allocation4], 128  }
 0x224   :  { %814 = vsyncadd [#allocation4], 4294967168 }
 0x225   :  { %575 = vsyncpa [#allocation3], 1 }
 0x226   :  { %576 = vsyncpa [#allocation6], 1 }
 0x227   :  { %577 = vsyncpa [#allocation9], 1 }
 0x228   :  { %578 = vsyncpa [#allocation4], 1 }

</bundles_post_ra>
